<compile_context>
chip_gen: v7x
topology: tpu7x:2x2x1
jax: 0.10.0
libtpu: 0.0.40
codegen_flags: <defaults>
</compile_context>

<pallas_src>
import functools

import jax
import jax.numpy as jnp
import numpy as np
from jax import lax
from jax.experimental import pallas as pl
from jax.experimental.pallas import tpu as pltpu


def _round_up(v, m):
    return (v + m - 1) // m * m


def _choose_tiles(H, W, C, itemsize):
    """Pick (row_tile TH, channel_tile TC, padded scratch width Wp)."""
    # Channel tile: lane-dense (multiple of 128) when C allows it.
    if C % 128 == 0:
        TC = 128
        for cand in (512, 384, 256, 128):
            if C % cand == 0:
                TC = cand
                break
    else:
        TC = C
    # Keep the sublane (W) dim of the scratch tile 8-aligned.
    Wp = _round_up(W + 2, 8)
    # Row tile: largest divisor of H whose double-buffered working set fits
    # comfortably under every TPU generation's default scoped-VMEM limit.
    budget = 6 * 1024 * 1024
    TH = 1
    for cand in range(H, 0, -1):
        if H % cand:
            continue
        foot = (4 * cand * W * TC          # 2x input + 2x output (double-buffered)
                + (cand + 2) * Wp * TC     # zero-padded scratch tile
                + 4 * W * TC) * itemsize   # halo-row blocks (double-buffered)
        if foot <= budget:
            TH = cand
            break
    return TH, TC, Wp


def _dwconv_kernel(c_ref, p_ref, n_ref, w_ref, b_ref, o_ref, xpad_ref,
                   *, TH, W, Wp, TC):
    """One (batch, channel-tile, row-tile) block of the depthwise 3x3 conv."""
    hi = pl.program_id(2)
    n_row_tiles = pl.num_programs(2)
    dt = xpad_ref.dtype

    # ---- Assemble the zero-padded (TH+2, Wp, TC) tile in VMEM scratch. ----
    # Halo columns (left col 0, right cols W+1 .. Wp-1) are always zero.  They
    # are re-zeroed every step (tiny) so the kernel stays correct however the
    # grid is sharded across cores.
    xpad_ref[:, 0:1, :] = jnp.zeros((TH + 2, 1, TC), dt)
    xpad_ref[:, W + 1:Wp, :] = jnp.zeros((TH + 2, Wp - (W + 1), TC), dt)
    # Interior rows: the current row tile.
    xpad_ref[1:TH + 1, 1:W + 1, :] = c_ref[0]

    # Top / bottom halo rows: neighbour row, or zeros at the image border.
    zero_row = jnp.zeros((1, W, TC), dt)

    @pl.when(hi > 0)
    def _():
        xpad_ref[0:1, 1:W + 1, :] = p_ref[0]

    @pl.when(hi == 0)
    def _():
        xpad_ref[0:1, 1:W + 1, :] = zero_row

    @pl.when(hi < n_row_tiles - 1)
    def _():
        xpad_ref[TH + 1:TH + 2, 1:W + 1, :] = n_ref[0]

    @pl.when(hi == n_row_tiles - 1)
    def _():
        xpad_ref[TH + 1:TH + 2, 1:W + 1, :] = zero_row

    # ---- 9-tap depthwise MAC, f32 accumulation, bias folded into init. ----
    w = w_ref[...].astype(jnp.float32)                    # (3, 3, TC), loaded once
    bias = b_ref[0].astype(jnp.float32)                   # (TC,)
    acc = jnp.broadcast_to(bias[None, None, :], (TH, W, TC))
    for kh in range(3):
        for kw in range(3):
            tap = w[kh, kw, :][None, None, :]
            # Slice the Ref per tap -> offset vector loads, no register shifts.
            acc = acc + xpad_ref[kh:kh + TH, kw:kw + W, :].astype(jnp.float32) * tap
    o_ref[0] = acc.astype(o_ref.dtype)


def dwconv_forward(x, weight, bias, H, W, *, row_tile=None, channel_tile=None):
    """x: (B, N, C), N == H*W. weight: (C, 1, 3, 3) (PyTorch layout). bias: (C,)."""
    B, N, C = x.shape
    assert N == H * W, "N must equal H*W"

    # Glue: sequence -> NHWC image; depthwise filter (C,1,3,3) -> (3,3,C).
    x_img = x.reshape(B, H, W, C)
    w_hwc = jnp.transpose(weight[:, 0, :, :], (1, 2, 0))      # (3, 3, C)
    b_2d = bias.reshape(1, C)

    TH, TC, Wp = _choose_tiles(H, W, C, jnp.dtype(x.dtype).itemsize)
    if row_tile is not None:
        assert H % row_tile == 0
        TH = row_tile
    if channel_tile is not None:
        assert C % channel_tile == 0
        TC = channel_tile
    nH = H // TH
    nC = C // TC

    kernel = functools.partial(_dwconv_kernel, TH=TH, W=W, Wp=Wp, TC=TC)

    out_img = pl.pallas_call(
        kernel,
        out_shape=jax.ShapeDtypeStruct((B, H, W, C), x.dtype),
        grid_spec=pltpu.PrefetchScalarGridSpec(
            num_scalar_prefetch=0,
            # Row axis innermost: weight / bias block indices stay constant in
            # the inner loop (no re-fetch), row tiles stream through the pipe.
            grid=(B, nC, nH),
            in_specs=[
                # Current row tile.
                pl.BlockSpec((1, TH, W, TC), lambda b, ci, hi: (b, hi, 0, ci)),
                # One halo row above (clamped index; zero-filled in-kernel at hi == 0).
                pl.BlockSpec((1, 1, W, TC),
                             lambda b, ci, hi: (b, jnp.maximum(hi * TH - 1, 0), 0, ci)),
                # One halo row below (clamped; zero-filled at the last row tile).
                pl.BlockSpec((1, 1, W, TC),
                             lambda b, ci, hi: (b, jnp.minimum(hi * TH + TH, H - 1), 0, ci)),
                # Depthwise taps + bias for this channel tile.
                pl.BlockSpec((3, 3, TC), lambda b, ci, hi: (0, 0, ci)),
                pl.BlockSpec((1, TC), lambda b, ci, hi: (0, ci)),
            ],
            out_specs=pl.BlockSpec((1, TH, W, TC), lambda b, ci, hi: (b, hi, 0, ci)),
            scratch_shapes=[pltpu.VMEM((TH + 2, Wp, TC), x.dtype)],
        ),
        compiler_params=pltpu.CompilerParams(
            dimension_semantics=("parallel", "parallel", "parallel")),
    )(x_img, x_img, x_img, w_hwc, b_2d)

    # Glue: image -> sequence, matching PyTorch's flatten(2).transpose(1, 2).
    return out_img.reshape(B, N, C)


def _reference_dwconv(x, weight, bias, H, W):
    """Pure-JAX reference (depthwise conv via lax.conv_general_dilated)."""
    B, N, C = x.shape
    x_img = x.reshape(B, H, W, C)
    rhs = jnp.transpose(weight, (2, 3, 1, 0))  # (3, 3, 1, C) HWIO
    out = lax.conv_general_dilated(
        x_img.astype(jnp.float32), rhs.astype(jnp.float32),
        window_strides=(1, 1), padding=((1, 1), (1, 1)),
        dimension_numbers=("NHWC", "HWIO", "NHWC"),
        feature_group_count=C)
    out = out + bias.astype(jnp.float32)[None, None, None, :]
    return out.reshape(B, N, C).astype(x.dtype)


if __name__ == "__main__":
    # Small, module-consistent shapes: B=2, dim(C)=32, H=W=16 -> N=256.
    B, C, H, W = 2, 32, 16, 16
    N = H * W

    key = jax.random.PRNGKey(0)
    kx, kw, kb = jax.random.split(key, 3)

    x = jax.random.normal(kx, (B, N, C), dtype=jnp.float32)
    # PyTorch depthwise Conv2d weight shape: (C, 1, 3, 3).
    weight = jax.random.normal(kw, (C, 1, 3, 3), dtype=jnp.float32) * 0.1
    bias = jax.random.normal(kb, (C,), dtype=jnp.float32) * 0.1

    ref = _reference_dwconv(x, weight, bias, H, W)

    # Auto-chosen tiles (single row tile at this small shape).
    out_auto = jax.block_until_ready(dwconv_forward(x, weight, bias, H, W))
    np.testing.assert_allclose(np.asarray(out_auto), np.asarray(ref),
                               rtol=1e-5, atol=1e-5)

    # Forced multi-row-tile run to exercise the in-kernel halo / border masking.
    out_tiled = jax.block_until_ready(
        dwconv_forward(x, weight, bias, H, W, row_tile=4))
    np.testing.assert_allclose(np.asarray(out_tiled), np.asarray(ref),
                               rtol=1e-5, atol=1e-5)

    print("KERNEL_OK")
</pallas_src>

<mosaic_0001>
module attributes {stable_mosaic.version = 11 : i64} {
  func.func @_dwconv_kernel(%arg0: i32, %arg1: i32, %arg2: i32, %arg3: memref<1x16x16x32xf32, #tpu.memory_space<vmem>>, %arg4: memref<1x1x16x32xf32, #tpu.memory_space<vmem>>, %arg5: memref<1x1x16x32xf32, #tpu.memory_space<vmem>>, %arg6: memref<3x3x32xf32, #tpu.memory_space<vmem>>, %arg7: memref<1x32xf32, #tpu.memory_space<vmem>>, %arg8: memref<1x16x16x32xf32, #tpu.memory_space<vmem>>, %arg9: memref<18x24x32xf32, #tpu.memory_space<vmem>>) attributes {dimension_semantics = [#tpu.dimension_semantics<parallel>, #tpu.dimension_semantics<parallel>, #tpu.dimension_semantics<parallel>], iteration_bounds = array<i64: 2, 1, 1>, scalar_prefetch = 0 : i64, scratch_operands = 1 : i64, tpu.core_type = #tpu.core_type<tc>, window_params = [{transform_indices = @transform_0, window_bounds = array<i64: 1, 16, 16, 32>}, {transform_indices = @transform_1, window_bounds = array<i64: 1, 1, 16, 32>}, {transform_indices = @transform_2, window_bounds = array<i64: 1, 1, 16, 32>}, {transform_indices = @transform_3, window_bounds = array<i64: 3, 3, 32>}, {transform_indices = @transform_4, window_bounds = array<i64: 1, 32>}, {transform_indices = @transform_5, window_bounds = array<i64: 1, 16, 16, 32>}]} {
    %cst = arith.constant 0.000000e+00 : f32
    %0 = vector.broadcast %cst : f32 to vector<18x1x32xf32>
    %c0 = arith.constant 0 : index
    %c0_0 = arith.constant 0 : index
    %c0_1 = arith.constant 0 : index
    %1 = vector.load %arg9[%c0, %c0_0, %c0_1] : memref<18x24x32xf32, #tpu.memory_space<vmem>>, vector<18x1x32xf32>
    tpu.vector_store %arg9[%c0, %c0_0, %c0_1], %0 {strides = array<i32>} : memref<18x24x32xf32, #tpu.memory_space<vmem>>, vector<18x1x32xf32>,
    %cst_2 = arith.constant 0.000000e+00 : f32
    %2 = vector.broadcast %cst_2 : f32 to vector<18x7x32xf32>
    %c0_3 = arith.constant 0 : index
    %c17 = arith.constant 17 : index
    %c0_4 = arith.constant 0 : index
    %3 = vector.load %arg9[%c0_3, %c17, %c0_4] : memref<18x24x32xf32, #tpu.memory_space<vmem>>, vector<18x7x32xf32>
    tpu.vector_store %arg9[%c0_3, %c17, %c0_4], %2 {strides = array<i32>} : memref<18x24x32xf32, #tpu.memory_space<vmem>>, vector<18x7x32xf32>,
    %c0_5 = arith.constant 0 : index
    %c0_6 = arith.constant 0 : index
    %c0_7 = arith.constant 0 : index
    %c0_8 = arith.constant 0 : index
    %4 = vector.load %arg3[%c0_5, %c0_6, %c0_7, %c0_8] : memref<1x16x16x32xf32, #tpu.memory_space<vmem>>, vector<1x16x16x32xf32>
    %5 = vector.shape_cast %4 : vector<1x16x16x32xf32> to vector<16x16x32xf32>
    %c1 = arith.constant 1 : index
    %c1_9 = arith.constant 1 : index
    %c0_10 = arith.constant 0 : index
    %6 = vector.load %arg9[%c1, %c1_9, %c0_10] : memref<18x24x32xf32, #tpu.memory_space<vmem>>, vector<16x16x32xf32>
    tpu.vector_store %arg9[%c1, %c1_9, %c0_10], %5 {strides = array<i32>} : memref<18x24x32xf32, #tpu.memory_space<vmem>>, vector<16x16x32xf32>,
    %cst_11 = arith.constant 0.000000e+00 : f32
    %7 = vector.broadcast %cst_11 : f32 to vector<1x16x32xf32>
    %c0_i32 = arith.constant 0 : i32
    %8 = arith.cmpi sgt, %arg2, %c0_i32 : i32
    %9 = arith.extui %8 : i1 to i32
    %c0_i32_12 = arith.constant 0 : i32
    %10 = arith.cmpi ne, %9, %c0_i32_12 : i32
    scf.if %10 {
      %c0_54 = arith.constant 0 : index
      %c0_55 = arith.constant 0 : index
      %c0_56 = arith.constant 0 : index
      %c0_57 = arith.constant 0 : index
      %92 = vector.load %arg4[%c0_54, %c0_55, %c0_56, %c0_57] : memref<1x1x16x32xf32, #tpu.memory_space<vmem>>, vector<1x1x16x32xf32>
      %93 = vector.shape_cast %92 : vector<1x1x16x32xf32> to vector<1x16x32xf32>
      %c0_58 = arith.constant 0 : index
      %c1_59 = arith.constant 1 : index
      %c0_60 = arith.constant 0 : index
      %94 = vector.load %arg9[%c0_58, %c1_59, %c0_60] : memref<18x24x32xf32, #tpu.memory_space<vmem>>, vector<1x16x32xf32>
      tpu.vector_store %arg9[%c0_58, %c1_59, %c0_60], %93 {strides = array<i32>} : memref<18x24x32xf32, #tpu.memory_space<vmem>>, vector<1x16x32xf32>,
    } else {
    }
    %c0_i32_13 = arith.constant 0 : i32
    %11 = arith.cmpi eq, %arg2, %c0_i32_13 : i32
    %12 = arith.extui %11 : i1 to i32
    %c0_i32_14 = arith.constant 0 : i32
    %13 = arith.cmpi ne, %12, %c0_i32_14 : i32
    scf.if %13 {
      %c0_54 = arith.constant 0 : index
      %c1_55 = arith.constant 1 : index
      %c0_56 = arith.constant 0 : index
      %92 = vector.load %arg9[%c0_54, %c1_55, %c0_56] : memref<18x24x32xf32, #tpu.memory_space<vmem>>, vector<1x16x32xf32>
      tpu.vector_store %arg9[%c0_54, %c1_55, %c0_56], %7 {strides = array<i32>} : memref<18x24x32xf32, #tpu.memory_space<vmem>>, vector<1x16x32xf32>,
    } else {
    }
    %c0_i32_15 = arith.constant 0 : i32
    %14 = arith.cmpi slt, %arg2, %c0_i32_15 : i32
    %15 = arith.extui %14 : i1 to i32
    %c0_i32_16 = arith.constant 0 : i32
    %16 = arith.cmpi ne, %15, %c0_i32_16 : i32
    scf.if %16 {
      %c0_54 = arith.constant 0 : index
      %c0_55 = arith.constant 0 : index
      %c0_56 = arith.constant 0 : index
      %c0_57 = arith.constant 0 : index
      %92 = vector.load %arg5[%c0_54, %c0_55, %c0_56, %c0_57] : memref<1x1x16x32xf32, #tpu.memory_space<vmem>>, vector<1x1x16x32xf32>
      %93 = vector.shape_cast %92 : vector<1x1x16x32xf32> to vector<1x16x32xf32>
      %c17_58 = arith.constant 17 : index
      %c1_59 = arith.constant 1 : index
      %c0_60 = arith.constant 0 : index
      %94 = vector.load %arg9[%c17_58, %c1_59, %c0_60] : memref<18x24x32xf32, #tpu.memory_space<vmem>>, vector<1x16x32xf32>
      tpu.vector_store %arg9[%c17_58, %c1_59, %c0_60], %93 {strides = array<i32>} : memref<18x24x32xf32, #tpu.memory_space<vmem>>, vector<1x16x32xf32>,
    } else {
    }
    %c0_i32_17 = arith.constant 0 : i32
    %17 = arith.cmpi eq, %arg2, %c0_i32_17 : i32
    %18 = arith.extui %17 : i1 to i32
    %c0_i32_18 = arith.constant 0 : i32
    %19 = arith.cmpi ne, %18, %c0_i32_18 : i32
    scf.if %19 {
      %c17_54 = arith.constant 17 : index
      %c1_55 = arith.constant 1 : index
      %c0_56 = arith.constant 0 : index
      %92 = vector.load %arg9[%c17_54, %c1_55, %c0_56] : memref<18x24x32xf32, #tpu.memory_space<vmem>>, vector<1x16x32xf32>
      tpu.vector_store %arg9[%c17_54, %c1_55, %c0_56], %7 {strides = array<i32>} : memref<18x24x32xf32, #tpu.memory_space<vmem>>, vector<1x16x32xf32>,
    } else {
    }
    %c0_19 = arith.constant 0 : index
    %c0_20 = arith.constant 0 : index
    %c0_21 = arith.constant 0 : index
    %20 = vector.load %arg6[%c0_19, %c0_20, %c0_21] : memref<3x3x32xf32, #tpu.memory_space<vmem>>, vector<3x3x32xf32>
    %c0_22 = arith.constant 0 : index
    %c0_23 = arith.constant 0 : index
    %21 = vector.load %arg7[%c0_22, %c0_23] : memref<1x32xf32, #tpu.memory_space<vmem>>, vector<1x32xf32>
    %22 = vector.shape_cast %21 : vector<1x32xf32> to vector<32xf32>
    %23 = vector.shape_cast %22 : vector<32xf32> to vector<1x1x32xf32>
    %24 = vector.shape_cast %23 : vector<1x1x32xf32> to vector<1x1x32xf32>
    %25 = vector.broadcast %24 : vector<1x1x32xf32> to vector<16x16x32xf32>
    %26 = vector.extract_strided_slice %20 {offsets = [0, 0, 0], sizes = [1, 1, 32], strides = [1, 1, 1]} : vector<3x3x32xf32> to vector<1x1x32xf32>
    %27 = vector.shape_cast %26 : vector<1x1x32xf32> to vector<32xf32>
    %28 = vector.shape_cast %27 : vector<32xf32> to vector<1x1x32xf32>
    %c0_24 = arith.constant 0 : index
    %c0_25 = arith.constant 0 : index
    %c0_26 = arith.constant 0 : index
    %29 = vector.load %arg9[%c0_24, %c0_25, %c0_26] : memref<18x24x32xf32, #tpu.memory_space<vmem>>, vector<16x16x32xf32>
    %30 = vector.broadcast %28 : vector<1x1x32xf32> to vector<16x16x32xf32>
    %31 = arith.mulf %29, %30 : vector<16x16x32xf32>
    %32 = arith.addf %25, %31 : vector<16x16x32xf32>
    %33 = vector.extract_strided_slice %20 {offsets = [0, 1, 0], sizes = [1, 1, 32], strides = [1, 1, 1]} : vector<3x3x32xf32> to vector<1x1x32xf32>
    %34 = vector.shape_cast %33 : vector<1x1x32xf32> to vector<32xf32>
    %35 = vector.shape_cast %34 : vector<32xf32> to vector<1x1x32xf32>
    %c0_27 = arith.constant 0 : index
    %c1_28 = arith.constant 1 : index
    %c0_29 = arith.constant 0 : index
    %36 = vector.load %arg9[%c0_27, %c1_28, %c0_29] : memref<18x24x32xf32, #tpu.memory_space<vmem>>, vector<16x16x32xf32>
    %37 = vector.broadcast %35 : vector<1x1x32xf32> to vector<16x16x32xf32>
    %38 = arith.mulf %36, %37 : vector<16x16x32xf32>
    %39 = arith.addf %32, %38 : vector<16x16x32xf32>
    %40 = vector.extract_strided_slice %20 {offsets = [0, 2, 0], sizes = [1, 1, 32], strides = [1, 1, 1]} : vector<3x3x32xf32> to vector<1x1x32xf32>
    %41 = vector.shape_cast %40 : vector<1x1x32xf32> to vector<32xf32>
    %42 = vector.shape_cast %41 : vector<32xf32> to vector<1x1x32xf32>
    %c0_30 = arith.constant 0 : index
    %c2 = arith.constant 2 : index
    %c0_31 = arith.constant 0 : index
    %43 = vector.load %arg9[%c0_30, %c2, %c0_31] : memref<18x24x32xf32, #tpu.memory_space<vmem>>, vector<16x16x32xf32>
    %44 = vector.broadcast %42 : vector<1x1x32xf32> to vector<16x16x32xf32>
    %45 = arith.mulf %43, %44 : vector<16x16x32xf32>
    %46 = arith.addf %39, %45 : vector<16x16x32xf32>
    %47 = vector.extract_strided_slice %20 {offsets = [1, 0, 0], sizes = [1, 1, 32], strides = [1, 1, 1]} : vector<3x3x32xf32> to vector<1x1x32xf32>
    %48 = vector.shape_cast %47 : vector<1x1x32xf32> to vector<32xf32>
    %49 = vector.shape_cast %48 : vector<32xf32> to vector<1x1x32xf32>
    %c1_32 = arith.constant 1 : index
    %c0_33 = arith.constant 0 : index
    %c0_34 = arith.constant 0 : index
    %50 = vector.load %arg9[%c1_32, %c0_33, %c0_34] : memref<18x24x32xf32, #tpu.memory_space<vmem>>, vector<16x16x32xf32>
    %51 = vector.broadcast %49 : vector<1x1x32xf32> to vector<16x16x32xf32>
    %52 = arith.mulf %50, %51 : vector<16x16x32xf32>
    %53 = arith.addf %46, %52 : vector<16x16x32xf32>
    %54 = vector.extract_strided_slice %20 {offsets = [1, 1, 0], sizes = [1, 1, 32], strides = [1, 1, 1]} : vector<3x3x32xf32> to vector<1x1x32xf32>
    %55 = vector.shape_cast %54 : vector<1x1x32xf32> to vector<32xf32>
    %56 = vector.shape_cast %55 : vector<32xf32> to vector<1x1x32xf32>
    %c1_35 = arith.constant 1 : index
    %c1_36 = arith.constant 1 : index
    %c0_37 = arith.constant 0 : index
    %57 = vector.load %arg9[%c1_35, %c1_36, %c0_37] : memref<18x24x32xf32, #tpu.memory_space<vmem>>, vector<16x16x32xf32>
    %58 = vector.broadcast %56 : vector<1x1x32xf32> to vector<16x16x32xf32>
    %59 = arith.mulf %57, %58 : vector<16x16x32xf32>
    %60 = arith.addf %53, %59 : vector<16x16x32xf32>
    %61 = vector.extract_strided_slice %20 {offsets = [1, 2, 0], sizes = [1, 1, 32], strides = [1, 1, 1]} : vector<3x3x32xf32> to vector<1x1x32xf32>
    %62 = vector.shape_cast %61 : vector<1x1x32xf32> to vector<32xf32>
    %63 = vector.shape_cast %62 : vector<32xf32> to vector<1x1x32xf32>
    %c1_38 = arith.constant 1 : index
    %c2_39 = arith.constant 2 : index
    %c0_40 = arith.constant 0 : index
    %64 = vector.load %arg9[%c1_38, %c2_39, %c0_40] : memref<18x24x32xf32, #tpu.memory_space<vmem>>, vector<16x16x32xf32>
    %65 = vector.broadcast %63 : vector<1x1x32xf32> to vector<16x16x32xf32>
    %66 = arith.mulf %64, %65 : vector<16x16x32xf32>
    %67 = arith.addf %60, %66 : vector<16x16x32xf32>
    %68 = vector.extract_strided_slice %20 {offsets = [2, 0, 0], sizes = [1, 1, 32], strides = [1, 1, 1]} : vector<3x3x32xf32> to vector<1x1x32xf32>
    %69 = vector.shape_cast %68 : vector<1x1x32xf32> to vector<32xf32>
    %70 = vector.shape_cast %69 : vector<32xf32> to vector<1x1x32xf32>
    %c2_41 = arith.constant 2 : index
    %c0_42 = arith.constant 0 : index
    %c0_43 = arith.constant 0 : index
    %71 = vector.load %arg9[%c2_41, %c0_42, %c0_43] : memref<18x24x32xf32, #tpu.memory_space<vmem>>, vector<16x16x32xf32>
    %72 = vector.broadcast %70 : vector<1x1x32xf32> to vector<16x16x32xf32>
    %73 = arith.mulf %71, %72 : vector<16x16x32xf32>
    %74 = arith.addf %67, %73 : vector<16x16x32xf32>
    %75 = vector.extract_strided_slice %20 {offsets = [2, 1, 0], sizes = [1, 1, 32], strides = [1, 1, 1]} : vector<3x3x32xf32> to vector<1x1x32xf32>
    %76 = vector.shape_cast %75 : vector<1x1x32xf32> to vector<32xf32>
    %77 = vector.shape_cast %76 : vector<32xf32> to vector<1x1x32xf32>
    %c2_44 = arith.constant 2 : index
    %c1_45 = arith.constant 1 : index
    %c0_46 = arith.constant 0 : index
    %78 = vector.load %arg9[%c2_44, %c1_45, %c0_46] : memref<18x24x32xf32, #tpu.memory_space<vmem>>, vector<16x16x32xf32>
    %79 = vector.broadcast %77 : vector<1x1x32xf32> to vector<16x16x32xf32>
    %80 = arith.mulf %78, %79 : vector<16x16x32xf32>
    %81 = arith.addf %74, %80 : vector<16x16x32xf32>
    %82 = vector.extract_strided_slice %20 {offsets = [2, 2, 0], sizes = [1, 1, 32], strides = [1, 1, 1]} : vector<3x3x32xf32> to vector<1x1x32xf32>
    %83 = vector.shape_cast %82 : vector<1x1x32xf32> to vector<32xf32>
    %84 = vector.shape_cast %83 : vector<32xf32> to vector<1x1x32xf32>
    %c2_47 = arith.constant 2 : index
    %c2_48 = arith.constant 2 : index
    %c0_49 = arith.constant 0 : index
    %85 = vector.load %arg9[%c2_47, %c2_48, %c0_49] : memref<18x24x32xf32, #tpu.memory_space<vmem>>, vector<16x16x32xf32>
    %86 = vector.broadcast %84 : vector<1x1x32xf32> to vector<16x16x32xf32>
    %87 = arith.mulf %85, %86 : vector<16x16x32xf32>
    %88 = arith.addf %81, %87 : vector<16x16x32xf32>
    %c0_50 = arith.constant 0 : index
    %c0_51 = arith.constant 0 : index
    %c0_52 = arith.constant 0 : index
    %c0_53 = arith.constant 0 : index
    %89 = vector.load %arg8[%c0_50, %c0_51, %c0_52, %c0_53] : memref<1x16x16x32xf32, #tpu.memory_space<vmem>>, vector<1x16x16x32xf32>
    %90 = vector.shape_cast %89 : vector<1x16x16x32xf32> to vector<16x16x32xf32>
    %91 = vector.shape_cast %88 : vector<16x16x32xf32> to vector<1x16x16x32xf32>
    tpu.vector_store %arg8[%c0_50, %c0_51, %c0_52, %c0_53], %91 {strides = array<i32>} : memref<1x16x16x32xf32, #tpu.memory_space<vmem>>, vector<1x16x16x32xf32>,
    return
  }
  func.func @transform_0(%arg0: i32, %arg1: i32, %arg2: i32) -> (i32, i32, i32, i32) {
    %c0_i32 = arith.constant 0 : i32
    %c0_i32_0 = arith.constant 0 : i32
    return %arg0, %arg2, %c0_i32, %arg1 : i32, i32, i32, i32
  }
  func.func @transform_1(%arg0: i32, %arg1: i32, %arg2: i32) -> (i32, i32, i32, i32) {
    %c16_i32 = arith.constant 16 : i32
    %0 = arith.muli %arg2, %c16_i32 : i32
    %c1_i32 = arith.constant 1 : i32
    %1 = arith.subi %0, %c1_i32 : i32
    %c0_i32 = arith.constant 0 : i32
    %2 = arith.maxsi %1, %c0_i32 : i32
    %c0_i32_0 = arith.constant 0 : i32
    %c0_i32_1 = arith.constant 0 : i32
    return %arg0, %2, %c0_i32_0, %arg1 : i32, i32, i32, i32
  }
  func.func @transform_2(%arg0: i32, %arg1: i32, %arg2: i32) -> (i32, i32, i32, i32) {
    %c16_i32 = arith.constant 16 : i32
    %0 = arith.muli %arg2, %c16_i32 : i32
    %c16_i32_0 = arith.constant 16 : i32
    %1 = arith.addi %0, %c16_i32_0 : i32
    %c15_i32 = arith.constant 15 : i32
    %2 = arith.minsi %1, %c15_i32 : i32
    %c0_i32 = arith.constant 0 : i32
    %c0_i32_1 = arith.constant 0 : i32
    return %arg0, %2, %c0_i32, %arg1 : i32, i32, i32, i32
  }
  func.func @transform_3(%arg0: i32, %arg1: i32, %arg2: i32) -> (i32, i32, i32) {
    %c0_i32 = arith.constant 0 : i32
    %c0_i32_0 = arith.constant 0 : i32
    %c0_i32_1 = arith.constant 0 : i32
    return %c0_i32, %c0_i32_0, %arg1 : i32, i32, i32
  }
  func.func @transform_4(%arg0: i32, %arg1: i32, %arg2: i32) -> (i32, i32) {
    %c0_i32 = arith.constant 0 : i32
    %c0_i32_0 = arith.constant 0 : i32
    return %c0_i32, %arg1 : i32, i32
  }
  func.func @transform_5(%arg0: i32, %arg1: i32, %arg2: i32) -> (i32, i32, i32, i32) {
    %c0_i32 = arith.constant 0 : i32
    %c0_i32_0 = arith.constant 0 : i32
    return %arg0, %arg2, %c0_i32, %arg1 : i32, i32, i32, i32
  }
}

</mosaic_0001>

<bundles_post_ra>
// kernel: tpu_custom_call.1
= control target key start
LH: loop header
LB: loop body
LE: loop exit
PB: predicated region body
PF: predicated region fallthrough
CT: control target
= control target key end

     0   :  { %s2934_s0 = inlined_call_operand.hbm [shape: f32[2,16,16,32], index: 0, kind: input, shape index: {}]   ;;  %s2935_s1 = inlined_call_operand.hbm [shape: f32[2,16,16,32], index: 1, kind: input, shape index: {}]   ;;  %s2936_s2 = inlined_call_operand.hbm [shape: f32[2,16,16,32], index: 2, kind: input, shape index: {}]   ;;  %s2937_s3 = inlined_call_operand.hbm [shape: f32[3,3,32], index: 3, kind: input, shape index: {}]   ;;  %s2938_s4 = inlined_call_operand.vmem [shape: f32[1,32], index: 4, kind: input, shape index: {}]   ;;  %s2939_s5 = inlined_call_operand.hbm [shape: f32[2,16,16,32], index: 5, kind: output, shape index: {}]  }
   0x1   :  { %2961 = sst [smem:[#allocation23_spill]] %s2935_s1 }
   0x2   :  { %2962 = sst [smem:[#allocation24_spill]] %s2939_s5 }
   0x3   :  { %10 = vsyncpa [#allocation4], 0 }
   0x4   :  { %12 = vsyncpa [#allocation4 + $0x1], 0 }
   0x5   :  { %13 = vsyncpa [#allocation7], 0 }
   0x6   :  { %15 = vsyncpa [#allocation7 + $0x1], 0 }
   0x7   :  { %16 = vsyncpa [#allocation10], 0 }
   0x8   :  { %17 = vsyncpa [#allocation5], 0 }
   0x9   :  { %19 = vsyncpa [#allocation5 + $0x1], 0  ;;  %s2072_s18 = smov 0   ;;  %s2074_s19 = smov 0  }
   0xa   :  { %s2076_s20 = smov 0   ;;  %s2078_s21 = smov 0  }
   0xb   :  { %s2080_s22 = smov 0   ;;  %s2082_s23 = smov 0  }
   0xc LB: > { %2963 = sst [smem:[#allocation16_spill]] %s2008_s18  ;;  %s44_s24 = sadd.s32 1, %s2024_s22  ;;  %s2028_s23 = sphi %s2082_s23, %s25_s23   ;;  %s2024_s22 = sphi %s2080_s22, %s2998_s22   ;;  %s2020_s21 = sphi %s2078_s21, %s2997_s21   ;;  %s2016_s20 = sphi %s2076_s20, %s2996_s20   ;;  %s2012_s19 = sphi %s2074_s19, %s3000_s19   ;;  %s2008_s18 = sphi %s2072_s18, %s2999_s18  }
   0xd   : > { %2964 = sst [smem:[#allocation17_spill]] %s2016_s20  ;;  %s55_s25 = sadd.s32 1, %s2016_s20 }
   0xe   : > { %2965 = sst [smem:[#allocation18_spill]] %s2024_s22  ;;  %p46_p0 = scmp.ge.s32.totalorder %s44_s24, 2 }
   0xf   : > { %2966 = sst [smem:[#allocation19_spill]] %s2028_s23  ;;  %p2940_p1 = scmp.ne.s32.totalorder %s2016_s20, %s2012_s19 }
  0x10   : > { %p63_p2 = scmp.eq.s32.totalorder %s2028_s23, 0  ;;  %s3002_s24 = smov (%p46_p0, %s44_s24), 0 }
  0x11   : > { %2967 = sst [smem:[#allocation20_spill]] %s3002_s24  ;;  %p1760_p5 = scmp.lt.s32.totalorder %s2028_s23, 2 }
  0x12   : > { %p64_p4 = por %p63_p2, %p2940_p1  ;;  %s48_s26 = ssub.s32 %s2024_s22, %s3002_s24 }
  0x13   : > { %s2117_s27 = sand.u32 1, %s2016_s20   ;;  %p53_p6 = scmp.eq.s32.totalorder %s48_s26, 0 }
  0x14   : > { %s2120_s28 = sshll.u32 %s2024_s22, 12  ;;  %p2122_p7 = pnand %p1760_p5, %p64_p4 }
  0x15   : > { %s2127_s30 = scalar_select %p53_p6, %s2016_s20, %s55_s25  }
  0x16   : > { %s2968_s29 = scalar_select %p2122_p7, 1, 0 }
  0x17   : > { %2969 = sst [smem:[#allocation21_spill]] %s2127_s30  ;;  %s296_s6 = sand.u32 1, %s2028_s23  }
  0x18   : > { %s1705_s7 = sshll.u32 %s2117_s27, 4  ;;  %s2970_s1 = sld [smem:[#allocation23_spill]] }
  0x19   : > { %s300_s11 = scalar_lea.vmem [#allocation6], %s1705_s7  ;;  %s2141_s13 = scalar_lea.sflag [#allocation7], %s296_s6 }
  0x1a   : > { %s314_s12 = sshll.u32 %s300_s11, 4  ;;  %p2147_p9 = pneg %p2122_p7  ;;  %s2139_s12 = int_to_ptr.vmem [resolvable:$true] %s314_s12 }
  0x1c   : > { %s2971_s15 = scalar_select %p2147_p9, 1, 0 }
  0x1e   : > { %s2135_s10 = scalar_lea.hbm %s2970_s1, %s2120_s28  ;;  %s1825_s25 = scalar_lea.hbm %s2970_s1, 8192 }
  0x1f   : > { %s1820_s14 = scalar_lea.hbm %s2135_s10, 256  ;;  %p1826_p12 = scmp.lt.u32.totalorder %s2135_s10, %s2970_s1 }
  0x20   : > { %p1821_p8 = scmp.ne.s32.totalorder %s2135_s10, %s1820_s14  ;;  %p1827_p13 = scmp.lt.u32.totalorder %s1825_s25, %s1820_s14 }
  0x21   : > { %p1829_p2 = scmp.lt.u32.totalorder %s1820_s14, %s2135_s10 }
  0x22   : > { %p1823_p10 = pnand %p2147_p9, %p1821_p8  ;;  %p1828_p0 = por %p1827_p13, %p1826_p12 }
  0x24   : > { %p1824_p11 = pneg %p1823_p10  ;;  %p1830_p4 = por %p1829_p2, %p1828_p0 }
  0x26   : > { %p1831_p5 = pnand %p1830_p4, %p1824_p11 }
  0x28   : > { %1834 = shalt.err (!%p1831_p5)
}
  0x29   : > { %s1835_s6 = scalar_lea.vmem %s2139_s12, 256  ;;  %s2030_s9 = smov [#allocation6]  }
  0x2a   : > { %p1836_p6 = scmp.ne.s32.totalorder %s2139_s12, %s1835_s6  ;;  %s1840_s11 = sshll.u32 %s2030_s9, 4  ;;  %s1841_s11 = int_to_ptr.vmem [resolvable:$false] %s1840_s11 }
  0x2b   : > { %s1842_s16 = scalar_lea.vmem %s1841_s11, 512  ;;  %p1843_p3 = scmp.lt.s32.totalorder %s2139_s12, %s1841_s11 }
  0x2c   : > { %p1838_p8 = pnand %p1836_p6, %p2147_p9  ;;  %p1844_p1 = scmp.lt.s32.totalorder %s1842_s16, %s1835_s6 }
  0x2e   : > { %p1839_p10 = pneg %p1838_p8  ;;  %p1845_p12 = por %p1844_p1, %p1843_p3 }
  0x30   : > { %p1846_p13 = pnand %p1845_p12, %p1839_p10 }
  0x32   : > { %1849 = shalt.err (!%p1846_p13)
}
  0x33   : > { %s2941_s14 = smov 128   ;;  %s2943_s17 = smov 8  }
  0x34   : > { %1751 = dma.hbm_to_vmem [thread:$0]  (!%p2122_p7), %s2135_s10, 256, %s2139_s12, %s2141_s13, %s2941_s14, %s2941_s14, %s2943_s17  }
  0x35   : > { %s328_s25 = scalar_lea.vmem [#allocation8], %s1705_s7  ;;  %s2179_s8 = sadd.s32 4294967295, %s2028_s23  }
  0x36   : > { %s342_s26 = sshll.u32 %s328_s25, 4  ;;  %s1697_s6 = sadd.s32 4294967294, %s2028_s23   ;;  %s2176_s26 = int_to_ptr.vmem [resolvable:$true] %s342_s26 }
  0x37   : > { %p68_p1 = scmp.ne.s32.totalorder %s2012_s19, %s2008_s18  ;;  %p2952_p3 = scmp.eq.s32.totalorder %s2179_s8, 0 }
  0x38   : > { %p224_p11 = scmp.eq.s32.totalorder %s2179_s8, 1  ;;  %p230_p0 = scmp.eq.s32.totalorder %s1697_s6, 1 }
  0x39   : > { %p2188_p2 = por %p2952_p3, %p68_p1  ;;  %p1698_p4 = scmp.ge.s32.totalorder %s2028_s23, 1 }
  0x3a   : > { %p2973_p5 = scmp.ne.s32.totalorder %s2016_s20, %s2012_s19  ;;  %p2200_p8 = por %p230_p0, %p68_p1 }
  0x3b   : > { %s2972_s7 = scalar_select %p2188_p2, 1, 0 }
  0x3c   : > { %p2196_p6 = por %p224_p11, %p2973_p5  ;;  %p237_p10 = scmp.lt.s32.totalorder %s2028_s23, 3 }
  0x3d   : > { %s2975_s12 = scalar_select %p2200_p8, 1, 0 }
  0x3e   : > { %s2974_s10 = scalar_select %p2196_p6, 1, 0 }
  0x3f   : > { %2976 = sst [smem:[#allocation22_spill]] %s2975_s12  ;;  %p2205_p12 = pnand %p1698_p4, %p237_p10 }
  0x40   : > { %s2033_s11 = smov [#allocation9]   ;;  %s1702_s25 = sshll.u32 %s2117_s27, 8 }
  0x41   : > { %s2977_s9 = scalar_select %p2205_p12, 1, 0 }
  0x42   : > { %s251_s16 = sshll.u32 %s2033_s11, 4  ;;  %p1741_p13 = pneg %p2205_p12  ;;  %s2209_s16 = int_to_ptr.vmem [resolvable:$true] %s251_s16 }
  0x43   : > { %s2218_s17 = scalar_lea.hbm %s2934_s0, %s2120_s28  ;;  %s275_s24 = scalar_lea.vmem [#allocation3], %s1702_s25 }
  0x44   : > { %p2222_p1 = pnand %p1741_p13, %p2952_p3  ;;  %s286_s22 = sshll.u32 %s275_s24, 4  ;;  %s2227_s22 = int_to_ptr.vmem [resolvable:$true] %s286_s22 }
  0x45   : > { %s1850_s23 = scalar_lea.hbm %s2937_s3, 192 }
  0x46   : > { %p1851_p11 = scmp.ne.s32.totalorder %s2937_s3, %s1850_s23  ;;  %p1852_p0 = pneg %p2222_p1 }
  0x47   : > { %p1857_p10 = scmp.lt.u32.totalorder %s1850_s23, %s2937_s3 }
  0x48   : > { %p1853_p4 = pnand %p1852_p0, %p1851_p11 }
  0x4a   : > { %p1854_p5 = pneg %p1853_p4 }
  0x4c   : > { %p1859_p13 = pnand %p1857_p10, %p1854_p5 }
  0x4e   : > { %1862 = shalt.err (!%p1859_p13)
}
  0x4f   : > { %s1863_s24 = scalar_lea.vmem %s2209_s16, 192  ;;  %p1871_p2 = scmp.lt.s32.totalorder %s2209_s16, %s2209_s16 }
  0x50   : > { %p1864_p3 = scmp.ne.s32.totalorder %s2209_s16, %s1863_s24  ;;  %p1872_p12 = scmp.lt.s32.totalorder %s1863_s24, %s1863_s24 }
  0x52   : > { %p1866_p8 = pnand %p1864_p3, %p1852_p0  ;;  %p1873_p7 = por %p1872_p12, %p1871_p2 }
  0x54   : > { %p1867_p6 = pneg %p1866_p8 }
  0x56   : > { %p1874_p9 = pnand %p1873_p7, %p1867_p6 }
  0x58   : > { %1877 = shalt.err (!%p1874_p9)
}
  0x59   : > { %s2034_s18 = smov 64   ;;  %s2035_s20 = smov 4  }
  0x5a   : > { %1744 = dma.hbm_to_vmem [thread:$0]  (!%p2222_p1), %s2937_s3, 192, %s2209_s16, [#allocation10], %s2034_s18, %s2034_s18, %s2035_s20  }
  0x5b   : > { %s272_s25 = scalar_lea.sflag [#allocation4], %s2117_s27  ;;  %s1878_s11 = scalar_lea.hbm %s2218_s17, 4096 }
  0x5c   : > { %p1879_p3 = scmp.ne.s32.totalorder %s2218_s17, %s1878_s11  ;;  %p2979_p7 = scmp.ne.s32.totalorder %s2971_s15, 0 }
  0x5d   : > { %s1883_s24 = scalar_lea.hbm %s2934_s0, 8192  ;;  %p1884_p6 = scmp.lt.u32.totalorder %s2218_s17, %s2934_s0 }
  0x5e   : > { %p1881_p9 = pnand %p1879_p3, %p2979_p7  ;;  %p1885_p8 = scmp.lt.u32.totalorder %s1883_s24, %s1878_s11 }
  0x5f   : > { %p1887_p11 = scmp.lt.u32.totalorder %s1878_s11, %s2218_s17 }
  0x60   : > { %p1882_p2 = pneg %p1881_p9  ;;  %p1886_p12 = por %p1885_p8, %p1884_p6 }
  0x62   : > { %p1888_p0 = por %p1887_p11, %p1886_p12 }
  0x64   : > { %p1889_p4 = pnand %p1888_p0, %p1882_p2 }
  0x66   : > { %1892 = shalt.err (!%p1889_p4)
}
  0x67   : > { %s1893_s1 = scalar_lea.vmem %s2227_s22, 4096  ;;  %s2036_s16 = smov [#allocation3]  }
  0x68   : > { %p1894_p1 = scmp.ne.s32.totalorder %s2227_s22, %s1893_s1  ;;  %s1898_s18 = sshll.u32 %s2036_s16, 4  ;;  %s1899_s18 = int_to_ptr.vmem [resolvable:$false] %s1898_s18 }
  0x69   : > { %s1900_s5 = scalar_lea.vmem %s1899_s18, 8192  ;;  %p1901_p13 = scmp.lt.s32.totalorder %s2227_s22, %s1899_s18 }
  0x6a   : > { %p1896_p5 = pnand %p1894_p1, %p2979_p7  ;;  %p1902_p3 = scmp.lt.s32.totalorder %s1900_s5, %s1893_s1 }
  0x6c   : > { %p1897_p10 = pneg %p1896_p5  ;;  %p1903_p9 = por %p1902_p3, %p1901_p13 }
  0x6e   : > { %p1904_p6 = pnand %p1903_p9, %p1897_p10 }
  0x70   : > { %1907 = shalt.err (!%p1904_p6)
}
  0x71   : > { %p2980_p2 = scmp.ne.s32.totalorder %s2968_s29, 0  ;;  %s2981_s30 = smov 8  }
  0x72   : > { %s2982_s20 = smov 128   ;;  %s2983_s23 = sadd.s32 3840, %s2120_s28 }
  0x73   : > { %1748 = dma.hbm_to_vmem [thread:$0]  (!%p2980_p2), %s2218_s17, 4096, %s2227_s22, %s272_s25, %s2982_s20, %s2982_s20, %s2981_s30  }
  0x74   : > { %s2282_s14 = scalar_lea.hbm %s2936_s2, %s2983_s23  ;;  %s1913_s1 = scalar_lea.hbm %s2936_s2, 8192 }
  0x75   : > { %s1908_s6 = scalar_lea.hbm %s2282_s14, 256  ;;  %p1914_p0 = scmp.lt.u32.totalorder %s2282_s14, %s2936_s2 }
  0x76   : > { %p1909_p8 = scmp.ne.s32.totalorder %s2282_s14, %s1908_s6  ;;  %p1915_p4 = scmp.lt.u32.totalorder %s1913_s1, %s1908_s6 }
  0x77   : > { %p1917_p5 = scmp.lt.u32.totalorder %s1908_s6, %s2282_s14 }
  0x78   : > { %p1911_p12 = pnand %p1909_p8, %p2979_p7  ;;  %p1916_p1 = por %p1915_p4, %p1914_p0 }
  0x7a   : > { %p1912_p11 = pneg %p1911_p12  ;;  %p1918_p10 = por %p1917_p5, %p1916_p1 }
  0x7c   : > { %p1919_p13 = pnand %p1918_p10, %p1912_p11 }
  0x7e   : > { %1922 = shalt.err (!%p1919_p13)
}
  0x7f   : > { %s1923_s17 = scalar_lea.vmem %s2176_s26, 256  ;;  %s2037_s25 = smov [#allocation8]  }
  0x80   : > { %p1924_p3 = scmp.ne.s32.totalorder %s2176_s26, %s1923_s17  ;;  %s1928_s16 = sshll.u32 %s2037_s25, 4  ;;  %s1929_s16 = int_to_ptr.vmem [resolvable:$false] %s1928_s16 }
  0x81   : > { %s1930_s18 = scalar_lea.vmem %s1929_s16, 512  ;;  %p1931_p8 = scmp.lt.s32.totalorder %s2176_s26, %s1929_s16 }
  0x82   : > { %p1926_p9 = pnand %p1924_p3, %p2979_p7  ;;  %p1932_p12 = scmp.lt.s32.totalorder %s1930_s18, %s1923_s17 }
  0x84   : > { %p1927_p6 = pneg %p1926_p9  ;;  %p1933_p0 = por %p1932_p12, %p1931_p8 }
  0x86   : > { %p1934_p4 = pnand %p1933_p0, %p1927_p6 }
  0x88   : > { %1937 = shalt.err (!%p1934_p4)
}
  0x89   : > { %1754 = dma.hbm_to_vmem [thread:$0]  (!%p2980_p2), %s2282_s14, 256, %s2176_s26, %s2141_s13, %s2982_s20, %s2982_s20, %s2981_s30  }
  0x8a   : > { %p2984_p7 = scmp.ne.s32.totalorder %s2977_s9, 0 }
  0x8b   : > { %s2312_s15 = sand.u32 (!%p2984_p7), 1, %s2012_s19   ;;  %p2985_p11 = scmp.ne.s32.totalorder (!%p2984_p7), %s2972_s7, 0 }
  0x8c   : > { %354 = sbr.rel (%p2984_p7) target bundleno = 352 (0x160), region = 40  ;;  %s1712_s5 = sshll.u32 (!%p2984_p7), %s2312_s15, 8 }
  0x8d   : > { %s357_s23 = scalar_lea.sflag (!%p2984_p7), [#allocation4], %s2312_s15  ;;  %s2318_s29 = scalar_lea.vmem (!%p2984_p7), [#allocation3], %s1712_s5 }
  0x93   : > { %1991 = dma.done.wait (%p2985_p11), %s357_s23, 4096  }
  0x94   : > { %1993 = vsyncadd (%p2985_p11), %s357_s23, 4294963200  ;;  %s365_s13 = sand.u32 1, %s2179_s8  }
  0x95   : > { %s366_s26 = scalar_lea.sflag [#allocation7], %s365_s13 }
  0x96   : > { %1995 = dma.done.wait (%p2985_p11), %s366_s26, 512  }
  0x97   : > { %1997 = vsyncadd (%p2985_p11), %s366_s26, 4294966784  ;;  %p2986_p2 = scmp.eq.s32.totalorder %s2179_s8, 0 }
  0x99   : > { %1999 = dma.done.wait (%p2986_p2), [#allocation10], 192   ;;  %p2987_p1 = pmov %p2986_p2 }
  0x9a   : > { %vm435_vm0 = vcmask 253952   ;;  %vm506_vm1 = vcmask 261120   ;;  %vm454_vm2 = vcmask 260096   ;;  %v2038_v0 = vmov 0.0   ;;  %v473_v2 = vld [vmem:[%s2318_s29] sm:$0xff]  ;;  %v474_v3 = vld [vmem:[%s2318_s29 + $0x8] sm:$0xff] }
  0x9b   : > { %2001 = vsyncadd (%p2987_p1), [#allocation10], 4294967104  ;;  %436 = vst.msk [vmem:[#allocation2] sm:$0x1] %vm435_vm0, %v2038_v0  ;;  %v610_v1 = vlaneseq  ;;  %v475_v4 = vld [vmem:[%s2318_s29 + $0x10] sm:$0xff]  ;;  %v476_v5 = vld [vmem:[%s2318_s29 + $0x18] sm:$0xff] }
  0x9c   : > { %437 = vst.msk [vmem:[#allocation2 + $0x18] sm:$0x1] %vm435_vm0, %v2038_v0  ;;  %438 = vst.msk [vmem:[#allocation2 + $0x30] sm:$0x1] %vm435_vm0, %v2038_v0  ;;  %v477_v6 = vld [vmem:[%s2318_s29 + $0x20] sm:$0xff]  ;;  %v478_v7 = vld [vmem:[%s2318_s29 + $0x28] sm:$0xff] }
  0x9d   : > { %439 = vst.msk [vmem:[#allocation2 + $0x48] sm:$0x1] %vm435_vm0, %v2038_v0  ;;  %440 = vst.msk [vmem:[#allocation2 + $0x60] sm:$0x1] %vm435_vm0, %v2038_v0  ;;  %v479_v8 = vld [vmem:[%s2318_s29 + $0x30] sm:$0xff]  ;;  %v480_v9 = vld [vmem:[%s2318_s29 + $0x38] sm:$0xff] }
  0x9e   : > { %441 = vst.msk [vmem:[#allocation2 + $0x78] sm:$0x1] %vm435_vm0, %v2038_v0  ;;  %442 = vst.msk [vmem:[#allocation2 + $0x90] sm:$0x1] %vm435_vm0, %v2038_v0  ;;  %v481_v10 = vld [vmem:[%s2318_s29 + $0x40] sm:$0xff]  ;;  %v482_v11 = vld [vmem:[%s2318_s29 + $0x48] sm:$0xff] }
  0x9f   : > { %443 = vst.msk [vmem:[#allocation2 + $0xa8] sm:$0x1] %vm435_vm0, %v2038_v0  ;;  %444 = vst.msk [vmem:[#allocation2 + $0xc0] sm:$0x1] %vm435_vm0, %v2038_v0  ;;  %v483_v12 = vld [vmem:[%s2318_s29 + $0x50] sm:$0xff]  ;;  %v484_v13 = vld [vmem:[%s2318_s29 + $0x58] sm:$0xff] }
  0xa0   : > { %445 = vst.msk [vmem:[#allocation2 + $0xd8] sm:$0x1] %vm435_vm0, %v2038_v0  ;;  %446 = vst.msk [vmem:[#allocation2 + $0xf0] sm:$0x1] %vm435_vm0, %v2038_v0  ;;  %v611_v14 = vshrl.u32 %v610_v1, 7  ;;  %v485_v15 = vld [vmem:[%s2318_s29 + $0x60] sm:$0xff] }
  0xa1   : > { %447 = vst.msk [vmem:[#allocation2 + $0x108] sm:$0x1] %vm435_vm0, %v2038_v0  ;;  %448 = vst.msk [vmem:[#allocation2 + $0x120] sm:$0x1] %vm435_vm0, %v2038_v0  ;;  %v486_v16 = vld [vmem:[%s2318_s29 + $0x68] sm:$0xff]  ;;  %v487_v17 = vld [vmem:[%s2318_s29 + $0x70] sm:$0xff] }
  0xa2   : > { %449 = vst.msk [vmem:[#allocation2 + $0x138] sm:$0x1] %vm435_vm0, %v2038_v0  ;;  %450 = vst.msk [vmem:[#allocation2 + $0x150] sm:$0x1] %vm435_vm0, %v2038_v0  ;;  %v488_v18 = vld [vmem:[%s2318_s29 + $0x78] sm:$0xff]  ;;  %v489_v19 = vld [vmem:[%s2318_s29 + $0x80] sm:$0xff] }
  0xa3   : > { %451 = vst.msk [vmem:[#allocation2 + $0x168] sm:$0x1] %vm435_vm0, %v2038_v0  ;;  %452 = vst.msk [vmem:[#allocation2 + $0x180] sm:$0x1] %vm435_vm0, %v2038_v0  ;;  %v490_v20 = vld [vmem:[%s2318_s29 + $0x88] sm:$0xff]  ;;  %v491_v21 = vld [vmem:[%s2318_s29 + $0x90] sm:$0xff] }
  0xa4   : > { %453 = vst.msk [vmem:[#allocation2 + $0x198] sm:$0x1] %vm435_vm0, %v2038_v0  ;;  %v492_v22 = vld [vmem:[%s2318_s29 + $0x98] sm:$0xff]  ;;  %v493_v23 = vld [vmem:[%s2318_s29 + $0xa0] sm:$0xff]  ;;  %v494_v24 = vld [vmem:[%s2318_s29 + $0xa8] sm:$0xff]  ;;  %v612_v27 = vsub.s32 0, %v611_v14 }
  0xa5   : > { %551 = vst.msk [vmem:[#allocation2 + $0x1] sm:$0xff] %vm506_vm1, %v2038_v0  ;;  %552 = vst.msk [vmem:[#allocation2 + $0x9] sm:$0xff] %vm506_vm1, %v2038_v0  ;;  %v495_v25 = vld [vmem:[%s2318_s29 + $0xb0] sm:$0xff]  ;;  %v496_v26 = vld [vmem:[%s2318_s29 + $0xb8] sm:$0xff]  ;;  %v712_v28 = vsub.s32 1, %v611_v14  ;;  %v812_v29 = vsub.s32 2, %v611_v14 }
  0xa6   : > { %566 = vst.msk [vmem:[#allocation2 + $0x199] sm:$0xff] %vm506_vm1, %v2038_v0  ;;  %567 = vst.msk [vmem:[#allocation2 + $0x1a1] sm:$0xff] %vm506_vm1, %v2038_v0  ;;  %v497_v30 = vld [vmem:[%s2318_s29 + $0xc0] sm:$0xff]  ;;  %v498_v31 = vld [vmem:[%s2318_s29 + $0xc8] sm:$0xff]  ;;  %s2523_s9 = scalar_lea.vmem [#allocation11], %s1712_s5  ;;  %s1727_s12 = sshll.u32 %s2020_s21, 12 }
  0xa7   : > { %455 = vst.msk [vmem:[#allocation2 + $0x11] sm:$0x7f] %vm454_vm2, %v2038_v0  ;;  %456 = vst.msk [vmem:[#allocation2 + $0x29] sm:$0x7f] %vm454_vm2, %v2038_v0  ;;  %v499_v32 = vld [vmem:[%s2318_s29 + $0xd0] sm:$0xff]  ;;  %v500_v33 = vld [vmem:[%s2318_s29 + $0xd8] sm:$0xff] }
  0xa8   : > { %457 = vst.msk [vmem:[#allocation2 + $0x41] sm:$0x7f] %vm454_vm2, %v2038_v0  ;;  %458 = vst.msk [vmem:[#allocation2 + $0x59] sm:$0x7f] %vm454_vm2, %v2038_v0  ;;  %v501_v34 = vld [vmem:[%s2318_s29 + $0xe0] sm:$0xff]  ;;  %v502_v35 = vld [vmem:[%s2318_s29 + $0xe8] sm:$0xff] }
  0xa9   : > { %459 = vst.msk [vmem:[#allocation2 + $0x71] sm:$0x7f] %vm454_vm2, %v2038_v0  ;;  %460 = vst.msk [vmem:[#allocation2 + $0x89] sm:$0x7f] %vm454_vm2, %v2038_v0  ;;  %v503_v36 = vld [vmem:[%s2318_s29 + $0xf0] sm:$0xff]  ;;  %v504_v37 = vld [vmem:[%s2318_s29 + $0xf8] sm:$0xff] }
  0xaa   : > { %461 = vst.msk [vmem:[#allocation2 + $0xa1] sm:$0x7f] %vm454_vm2, %v2038_v0  ;;  %462 = vst.msk [vmem:[#allocation2 + $0xb9] sm:$0x7f] %vm454_vm2, %v2038_v0  ;;  %v568_v38 = vld [vmem:[#allocation9] sm:$0x7] }
  0xab   : > { %463 = vst.msk [vmem:[#allocation2 + $0xd1] sm:$0x7f] %vm454_vm2, %v2038_v0  ;;  %464 = vst.msk [vmem:[#allocation2 + $0xe9] sm:$0x7f] %vm454_vm2, %v2038_v0  ;;  %v569_v39 = vld [vmem:[#allocation9 + $0x4] sm:$0x7]  ;;  %v2442_v42 = vrot.slane %v568_v38, %v612_v27  ;;  %v2444_v43 = vrot.slane %v568_v38, %v712_v28  ;;  %v2446_v44 = vrot.slane %v568_v38, %v812_v29 }
  0xac   : > { %465 = vst.msk [vmem:[#allocation2 + $0x101] sm:$0x7f] %vm454_vm2, %v2038_v0  ;;  %466 = vst.msk [vmem:[#allocation2 + $0x119] sm:$0x7f] %vm454_vm2, %v2038_v0  ;;  %v570_v40 = vld [vmem:[#allocation9 + $0x8] sm:$0x7]  ;;  %v2450_v51 = vrot.slane %v569_v39, %v612_v27  ;;  %v2452_v52 = vrot.slane %v569_v39, %v712_v28  ;;  %v2454_v55 = vrot.slane %v569_v39, %v812_v29 }
  0xad   : > { %467 = vst.msk [vmem:[#allocation2 + $0x131] sm:$0x7f] %vm454_vm2, %v2038_v0  ;;  %468 = vst.msk [vmem:[#allocation2 + $0x149] sm:$0x7f] %vm454_vm2, %v2038_v0  ;;  %v2440_v41 = vld [vmem:[%s2938_s4] ss:$0 sm:$0xff]  ;;  %v2456_v57 = vrot.slane %v570_v40, %v612_v27  ;;  %v2460_v60 = vrot.slane %v570_v40, %v712_v28 }
  0xae   : > { %469 = vst.msk [vmem:[#allocation2 + $0x161] sm:$0x7f] %vm454_vm2, %v2038_v0  ;;  %470 = vst.msk [vmem:[#allocation2 + $0x179] sm:$0x7f] %vm454_vm2, %v2038_v0  ;;  %v578_v45 = vld [vmem:[#allocation2] sm:$0xff]  ;;  %v579_v61 = vld [vmem:[#allocation2 + $0x8] sm:$0xff] }
  0xaf   : > { %471 = vst.msk [vmem:[#allocation2 + $0x191] sm:$0x7f] %vm454_vm2, %v2038_v0  ;;  %472 = vst.msk [vmem:[#allocation2 + $0x1a9] sm:$0x7f] %vm454_vm2, %v2038_v0  ;;  %v678_v46 = vld [vmem:[#allocation2 + $0x1] sm:$0xff]  ;;  %v614_v48 = vmul.f32 %v2442_v42, %v578_v45  ;;  %v679_v62 = vld [vmem:[#allocation2 + $0x9] sm:$0xff] }
  0xb0   : > { %507 = vst.msk [vmem:[#allocation2 + $0x19] sm:$0xff] %vm506_vm1, %v473_v2  ;;  %508 = vst.msk [vmem:[#allocation2 + $0x21] sm:$0xff] %vm506_vm1, %v474_v3  ;;  %v778_v47 = vld [vmem:[#allocation2 + $0x2] sm:$0xff]  ;;  %v714_v49 = vmul.f32 %v2444_v43, %v678_v46  ;;  %v779_v63 = vld [vmem:[#allocation2 + $0xa] sm:$0xff]  ;;  %v2463_v2 = vrot.slane %v570_v40, %v812_v29  ;;  %v615_v3 = vmul.f32 %v2442_v42, %v579_v61  ;;  %s1529_s11 = sshll.u32 %s2523_s9, 4  ;;  %s2988_s27 = sld [smem:[#allocation24_spill]]  ;;  %s2883_s11 = int_to_ptr.vmem [resolvable:$true] %s1529_s11 }
  0xb1   : > { %509 = vst.msk [vmem:[#allocation2 + $0x31] sm:$0xff] %vm506_vm1, %v475_v4  ;;  %510 = vst.msk [vmem:[#allocation2 + $0x39] sm:$0xff] %vm506_vm1, %v476_v5  ;;  %v646_v58 = vadd.f32 %v2440_v41, %v614_v48  ;;  %v814_v59 = vmul.f32 %v2446_v44, %v778_v47  ;;  %v715_v4 = vmul.f32 %v2444_v43, %v679_v62  ;;  %s1512_s21 = scalar_lea.sflag [#allocation5], %s2312_s15  ;;  %s1938_s1 = scalar_lea.vmem %s2883_s11, 4096 }
  0xb2   : > { %511 = vst.msk [vmem:[#allocation2 + $0x49] sm:$0xff] %vm506_vm1, %v477_v6  ;;  %512 = vst.msk [vmem:[#allocation2 + $0x51] sm:$0xff] %vm506_vm1, %v478_v7  ;;  %v815_v14 = vmul.f32 %v2446_v44, %v779_v63  ;;  %p1939_p5 = scmp.ne.s32.totalorder %s2883_s11, %s1938_s1  ;;  %p2989_p10 = scmp.ne.s32.totalorder %s2974_s10, 0 }
  0xb3   : > { %513 = vst.msk [vmem:[#allocation2 + $0x61] sm:$0xff] %vm506_vm1, %v479_v8  ;;  %514 = vst.msk [vmem:[#allocation2 + $0x69] sm:$0xff] %vm506_vm1, %v480_v9  ;;  %v746_v5 = vadd.f32 %v714_v49, %v646_v58  ;;  %s2039_s22 = smov [#allocation11]  }
  0xb4   : > { %515 = vst.msk [vmem:[#allocation2 + $0x79] sm:$0xff] %vm506_vm1, %v481_v10  ;;  %516 = vst.msk [vmem:[#allocation2 + $0x81] sm:$0xff] %vm506_vm1, %v482_v11  ;;  %p1940_p13 = pnand %p1939_p5, %p2989_p10  ;;  %s1942_s28 = sshll.u32 %s2039_s22, 4  ;;  %s1943_s28 = int_to_ptr.vmem [resolvable:$false] %s1942_s28 }
  0xb5   : > { %517 = vst.msk [vmem:[#allocation2 + $0x91] sm:$0xff] %vm506_vm1, %v483_v12  ;;  %518 = vst.msk [vmem:[#allocation2 + $0x99] sm:$0xff] %vm506_vm1, %v484_v13  ;;  %v647_v13 = vadd.f32 %v2440_v41, %v615_v3  ;;  %s1944_s17 = scalar_lea.vmem %s1943_s28, 8192  ;;  %p1945_p9 = scmp.lt.s32.totalorder %s2883_s11, %s1943_s28 }
  0xb6   : > { %519 = vst.msk [vmem:[#allocation2 + $0xa9] sm:$0xff] %vm506_vm1, %v485_v15  ;;  %520 = vst.msk [vmem:[#allocation2 + $0xb1] sm:$0xff] %vm506_vm1, %v486_v16  ;;  %v846_v16 = vadd.f32 %v814_v59, %v746_v5  ;;  %s2881_s24 = scalar_lea.hbm %s2988_s27, %s1727_s12  ;;  %p1941_p3 = pneg %p1940_p13 }
  0xb7   : > { %521 = vst.msk [vmem:[#allocation2 + $0xc1] sm:$0xff] %vm506_vm1, %v487_v17  ;;  %522 = vst.msk [vmem:[#allocation2 + $0xc9] sm:$0xff] %vm506_vm1, %v488_v18  ;;  %v878_v50 = vld [vmem:[#allocation2 + $0x18] sm:$0xff]  ;;  %v879_v9 = vld [vmem:[#allocation2 + $0x20] sm:$0xff]  ;;  %p1946_p6 = scmp.lt.s32.totalorder %s1944_s17, %s1938_s1 }
  0xb8   : > { %523 = vst.msk [vmem:[#allocation2 + $0xd9] sm:$0xff] %vm506_vm1, %v489_v19  ;;  %524 = vst.msk [vmem:[#allocation2 + $0xe1] sm:$0xff] %vm506_vm1, %v490_v20  ;;  %v978_v53 = vld [vmem:[#allocation2 + $0x19] sm:$0xff]  ;;  %v1179_v56 = vld [vmem:[#allocation2 + $0x30] sm:$0xff]  ;;  %v616_v0 = vmul.f32 %v878_v50, %v2442_v42  ;;  %v914_v6 = vmul.f32 %v2450_v51, %v878_v50 }
  0xb9   : > { %525 = vst.msk [vmem:[#allocation2 + $0xf1] sm:$0xff] %vm506_vm1, %v491_v21  ;;  %526 = vst.msk [vmem:[#allocation2 + $0xf9] sm:$0xff] %vm506_vm1, %v492_v22  ;;  %v1078_v54 = vld [vmem:[#allocation2 + $0x1a] sm:$0xff]  ;;  %v1279_v1 = vld [vmem:[#allocation2 + $0x31] sm:$0xff]  ;;  %v1014_v7 = vmul.f32 %v2452_v52, %v978_v53  ;;  %v1215_v12 = vmul.f32 %v2456_v57, %v1179_v56  ;;  %v716_v21 = vmul.f32 %v978_v53, %v2444_v43  ;;  %p1947_p8 = por %p1946_p6, %p1945_p9 }
  0xba   : > { %527 = vst.msk [vmem:[#allocation2 + $0x109] sm:$0xff] %vm506_vm1, %v493_v23  ;;  %528 = vst.msk [vmem:[#allocation2 + $0x111] sm:$0xff] %vm506_vm1, %v494_v24  ;;  %v1379_v8 = vld [vmem:[#allocation2 + $0x32] sm:$0xff]  ;;  %v979_v10 = vld [vmem:[#allocation2 + $0x21] sm:$0xff]  ;;  %v1114_v11 = vmul.f32 %v2454_v55, %v1078_v54  ;;  %v1315_v17 = vmul.f32 %v2460_v60, %v1279_v1  ;;  %v648_v20 = vadd.f32 %v2440_v41, %v616_v0 }
  0xbb   : > { %529 = vst.msk [vmem:[#allocation2 + $0x121] sm:$0xff] %vm506_vm1, %v495_v25  ;;  %530 = vst.msk [vmem:[#allocation2 + $0x129] sm:$0xff] %vm506_vm1, %v496_v26  ;;  %v1079_v15 = vld [vmem:[#allocation2 + $0x22] sm:$0xff]  ;;  %v1180_v18 = vld [vmem:[#allocation2 + $0x38] sm:$0xff]  ;;  %v1415_v22 = vmul.f32 %v2463_v2, %v1379_v8  ;;  %v747_v23 = vadd.f32 %v715_v4, %v647_v13  ;;  %v915_v24 = vmul.f32 %v2450_v51, %v879_v9  ;;  %p1948_p12 = pnand %p1947_p8, %p1941_p3 }
  0xbc   : > { %531 = vst.msk [vmem:[#allocation2 + $0x139] sm:$0xff] %vm506_vm1, %v497_v30  ;;  %532 = vst.msk [vmem:[#allocation2 + $0x141] sm:$0xff] %vm506_vm1, %v498_v31  ;;  %v2474_v19 = vld [vmem:[#allocation2 + $0x39] sm:$0xff]  ;;  %v1015_v25 = vmul.f32 %v2452_v52, %v979_v10  ;;  %v946_v27 = vadd.f32 %v914_v6, %v846_v16  ;;  %v1115_v28 = vmul.f32 %v2454_v55, %v1079_v15  ;;  %v2495_v46 = vld [vmem:[#allocation2 + $0x49] sm:$0xff] }
  0xbd   : > { %533 = vst.msk [vmem:[#allocation2 + $0x151] sm:$0xff] %vm506_vm1, %v499_v32  ;;  %534 = vst.msk [vmem:[#allocation2 + $0x159] sm:$0xff] %vm506_vm1, %v500_v33  ;;  %v2481_v26 = vld [vmem:[#allocation2 + $0x3a] sm:$0xff]  ;;  %v748_v29 = vadd.f32 %v716_v21, %v648_v20  ;;  %v816_v30 = vmul.f32 %v1078_v54, %v2446_v44  ;;  %v847_v31 = vadd.f32 %v815_v14, %v747_v23  ;;  %v2502_v59 = vld [vmem:[#allocation2 + $0x4a] sm:$0xff] }
  0xbe   : > { %535 = vst.msk [vmem:[#allocation2 + $0x169] sm:$0xff] %vm506_vm1, %v501_v34  ;;  %536 = vst.msk [vmem:[#allocation2 + $0x171] sm:$0xff] %vm506_vm1, %v502_v35  ;;  %v1216_v32 = vmul.f32 %v2456_v57, %v1180_v18  ;;  %v1316_v33 = vmul.f32 %v2460_v60, %v2474_v19  ;;  %v2488_v34 = vld [vmem:[#allocation2 + $0x48] sm:$0xff]  ;;  %v617_v35 = vmul.f32 %v879_v9, %v2442_v42  ;;  %v1182_v16 = vld [vmem:[#allocation2 + $0x50] sm:$0xff] }
  0xbf   : > { %537 = vst.msk [vmem:[#allocation2 + $0x181] sm:$0xff] %vm506_vm1, %v503_v36  ;;  %538 = vst.msk [vmem:[#allocation2 + $0x189] sm:$0xff] %vm506_vm1, %v504_v37  ;;  %v1046_v36 = vadd.f32 %v1014_v7, %v946_v27  ;;  %v1416_v37 = vmul.f32 %v2463_v2, %v2481_v26  ;;  %v848_v38 = vadd.f32 %v816_v30, %v748_v29 }
  0xc0   : > { %v916_v39 = vmul.f32 %v1179_v56, %v2450_v51  ;;  %v947_v40 = vadd.f32 %v915_v24, %v847_v31  ;;  %v1016_v45 = vmul.f32 %v1279_v1, %v2452_v52  ;;  %v649_v47 = vadd.f32 %v2440_v41, %v617_v35 }
  0xc1   : > { %v717_v48 = vmul.f32 %v979_v10, %v2444_v43  ;;  %v1146_v49 = vadd.f32 %v1114_v11, %v1046_v36  ;;  %v1116_v53 = vmul.f32 %v1379_v8, %v2454_v55  ;;  %v1217_v54 = vmul.f32 %v2456_v57, %v2488_v34 }
  0xc2   : > { %v948_v50 = vadd.f32 %v916_v39, %v848_v38  ;;  %v1047_v58 = vadd.f32 %v1015_v25, %v947_v40  ;;  %v817_v62 = vmul.f32 %v1079_v15, %v2446_v44  ;;  %v618_v63 = vmul.f32 %v1179_v56, %v2442_v42  ;;  %v1183_v38 = vld [vmem:[#allocation2 + $0x60] sm:$0xff] }
  0xc3   : > { %v749_v61 = vadd.f32 %v717_v48, %v649_v47  ;;  %v1247_v0 = vadd.f32 %v1215_v12, %v1146_v49  ;;  %v1317_v4 = vmul.f32 %v2460_v60, %v2495_v46  ;;  %v917_v5 = vmul.f32 %v1180_v18, %v2450_v51 }
  0xc4   : > { %v1048_v3 = vadd.f32 %v1016_v45, %v948_v50  ;;  %v1147_v6 = vadd.f32 %v1115_v28, %v1047_v58  ;;  %v650_v9 = vadd.f32 %v2440_v41, %v618_v63  ;;  %v718_v10 = vmul.f32 %v1279_v1, %v2444_v43  ;;  %v1282_v28 = vld [vmem:[#allocation2 + $0x51] sm:$0xff]  ;;  %v1283_v50 = vld [vmem:[#allocation2 + $0x61] sm:$0xff] }
  0xc5   : > { %v849_v7 = vadd.f32 %v817_v62, %v749_v61  ;;  %v1347_v11 = vadd.f32 %v1315_v17, %v1247_v0  ;;  %v1417_v14 = vmul.f32 %v2463_v2, %v2502_v59  ;;  %v1017_v56 = vmul.f32 %v2474_v19, %v2452_v52  ;;  %v1383_v63 = vld [vmem:[#allocation2 + $0x62] sm:$0xff] }
  0xc6   : > { %v1148_v13 = vadd.f32 %v1116_v53, %v1048_v3  ;;  %v1248_v12 = vadd.f32 %v1216_v32, %v1147_v6  ;;  %v750_v20 = vadd.f32 %v718_v10, %v650_v9  ;;  %v818_v21 = vmul.f32 %v1379_v8, %v2446_v44 }
  0xc7   : > { %v949_v15 = vadd.f32 %v917_v5, %v849_v7  ;;  %v1447_v23 = vadd.f32 %v1415_v22, %v1347_v11  ;;  %v1117_v1 = vmul.f32 %v2481_v26, %v2454_v55  ;;  %v918_v17 = vmul.f32 %v2488_v34, %v2450_v51  ;;  %v1184_v5 = vld [vmem:[#allocation2 + $0x68] sm:$0xff] }
  0xc8   : > { %v1249_v24 = vadd.f32 %v1217_v54, %v1148_v13  ;;  %v1348_v25 = vadd.f32 %v1316_v33, %v1248_v12  ;;  %v850_v29 = vadd.f32 %v818_v21, %v750_v20  ;;  %v619_v30 = vmul.f32 %v1180_v18, %v2442_v42  ;;  %v1382_v18 = vld [vmem:[#allocation2 + $0x52] sm:$0xff]  ;;  %v1284_v13 = vld [vmem:[#allocation2 + $0x69] sm:$0xff] }
  0xc9   : > { %v1049_v27 = vadd.f32 %v1017_v56, %v949_v15  ;;  %1479 = vst.msk [vmem:[%s2523_s9] sm:$0xff] %vm506_vm1, %v1447_v23  ;;  %v1218_v22 = vmul.f32 %v2456_v57, %v1182_v16  ;;  %v1018_v31 = vmul.f32 %v2495_v46, %v2452_v52  ;;  %v719_v32 = vmul.f32 %v2474_v19, %v2444_v43  ;;  %v1384_v23 = vld [vmem:[#allocation2 + $0x6a] sm:$0xff] }
  0xca   : > { %v1349_v8 = vadd.f32 %v1317_v4, %v1249_v24  ;;  %v1448_v33 = vadd.f32 %v1416_v37, %v1348_v25  ;;  %v950_v36 = vadd.f32 %v918_v17, %v850_v29  ;;  %v651_v39 = vadd.f32 %v2440_v41, %v619_v30 }
  0xcb   : > { %v1149_v35 = vadd.f32 %v1117_v1, %v1049_v27  ;;  %v1318_v45 = vmul.f32 %v2460_v60, %v1282_v28  ;;  %v1118_v47 = vmul.f32 %v2502_v59, %v2454_v55  ;;  %v819_v37 = vmul.f32 %v2481_v26, %v2446_v44 }
  0xcc   : > { %v1449_v40 = vadd.f32 %v1417_v14, %v1349_v8  ;;  %1480 = vst.msk [vmem:[%s2523_s9 + $0x8] sm:$0xff] %vm506_vm1, %v1448_v33  ;;  %v1050_v49 = vadd.f32 %v1018_v31, %v950_v36  ;;  %v751_v19 = vadd.f32 %v719_v32, %v651_v39  ;;  %v1418_v53 = vmul.f32 %v2463_v2, %v1382_v18  ;;  %v1185_v8 = vld [vmem:[#allocation2 + $0x78] sm:$0xff] }
  0xcd   : > { %v1250_v48 = vadd.f32 %v1218_v22, %v1149_v35  ;;  %v1219_v54 = vmul.f32 %v2456_v57, %v1183_v38  ;;  %v620_v58 = vmul.f32 %v2488_v34, %v2442_v42  ;;  %v919_v3 = vmul.f32 %v1182_v16, %v2450_v51  ;;  %v1285_v22 = vld [vmem:[#allocation2 + $0x79] sm:$0xff] }
  0xce   : > { %1481 = vst.msk [vmem:[%s2523_s9 + $0x10] sm:$0xff] %vm506_vm1, %v1449_v40  ;;  %v1150_v62 = vadd.f32 %v1118_v47, %v1050_v49  ;;  %v851_v0 = vadd.f32 %v819_v37, %v751_v19  ;;  %v1319_v4 = vmul.f32 %v2460_v60, %v1283_v50  ;;  %v720_v6 = vmul.f32 %v2495_v46, %v2444_v43 }
  0xcf   : > { %v1350_v61 = vadd.f32 %v1318_v45, %v1250_v48  ;;  %v652_v26 = vadd.f32 %v2440_v41, %v620_v58  ;;  %v1019_v34 = vmul.f32 %v1282_v28, %v2452_v52  ;;  %v1419_v11 = vmul.f32 %v2463_v2, %v1383_v63  ;;  %v1385_v45 = vld [vmem:[#allocation2 + $0x7a] sm:$0xff] }
  0xd0   : > { %v1251_v9 = vadd.f32 %v1219_v54, %v1150_v62  ;;  %v951_v10 = vadd.f32 %v919_v3, %v851_v0  ;;  %v820_v56 = vmul.f32 %v2502_v59, %v2446_v44  ;;  %v621_v12 = vmul.f32 %v1182_v16, %v2442_v42  ;;  %v1186_v58 = vld [vmem:[#allocation2 + $0x80] sm:$0xff] }
  0xd1   : > { %v1450_v7 = vadd.f32 %v1418_v53, %v1350_v61  ;;  %v752_v14 = vadd.f32 %v720_v6, %v652_v26  ;;  %v1119_v46 = vmul.f32 %v1382_v18, %v2454_v55  ;;  %v1220_v21 = vmul.f32 %v2456_v57, %v1184_v5  ;;  %v1286_v61 = vld [vmem:[#allocation2 + $0x81] sm:$0xff] }
  0xd2   : > { %v1351_v15 = vadd.f32 %v1319_v4, %v1251_v9  ;;  %v1051_v20 = vadd.f32 %v1019_v34, %v951_v10  ;;  %v920_v1 = vmul.f32 %v1183_v38, %v2450_v51  ;;  %v653_v17 = vadd.f32 %v2440_v41, %v621_v12  ;;  %v1386_v9 = vld [vmem:[#allocation2 + $0x82] sm:$0xff] }
  0xd3   : > { %1482 = vst.msk [vmem:[%s2523_s9 + $0x18] sm:$0xff] %vm506_vm1, %v1450_v7  ;;  %v852_v24 = vadd.f32 %v820_v56, %v752_v14  ;;  %v721_v25 = vmul.f32 %v1282_v28, %v2444_v43  ;;  %v1320_v16 = vmul.f32 %v2460_v60, %v1284_v13  ;;  %v1020_v29 = vmul.f32 %v1283_v50, %v2452_v52 }
  0xd4   : > { %v1451_v59 = vadd.f32 %v1419_v11, %v1351_v15  ;;  %v1151_v27 = vadd.f32 %v1119_v46, %v1051_v20  ;;  %v821_v32 = vmul.f32 %v1382_v18, %v2446_v44  ;;  %v622_v33 = vmul.f32 %v1183_v38, %v2442_v42 }
  0xd5   : > { %v952_v30 = vadd.f32 %v920_v1, %v852_v24  ;;  %v753_v31 = vadd.f32 %v721_v25, %v653_v17  ;;  %v1420_v36 = vmul.f32 %v2463_v2, %v1384_v23  ;;  %v1120_v28 = vmul.f32 %v1383_v63, %v2454_v55  ;;  %v1287_v24 = vld [vmem:[#allocation2 + $0x91] sm:$0xff] }
  0xd6   : > { %1483 = vst.msk [vmem:[%s2523_s9 + $0x20] sm:$0xff] %vm506_vm1, %v1451_v59  ;;  %v1252_v35 = vadd.f32 %v1220_v21, %v1151_v27  ;;  %v921_v39 = vmul.f32 %v1184_v5, %v2450_v51  ;;  %v654_v48 = vadd.f32 %v2440_v41, %v622_v33  ;;  %v722_v49 = vmul.f32 %v1283_v50, %v2444_v43  ;;  %v1187_v21 = vld [vmem:[#allocation2 + $0x90] sm:$0xff] }
  0xd7   : > { %v1052_v40 = vadd.f32 %v1020_v29, %v952_v30  ;;  %v853_v47 = vadd.f32 %v821_v32, %v753_v31  ;;  %v1221_v18 = vmul.f32 %v2456_v57, %v1185_v8  ;;  %v1321_v38 = vmul.f32 %v2460_v60, %v1285_v22  ;;  %v1387_v29 = vld [vmem:[#allocation2 + $0x92] sm:$0xff] }
  0xd8   : > { %v1352_v19 = vadd.f32 %v1320_v16, %v1252_v35  ;;  %v1021_v37 = vmul.f32 %v1284_v13, %v2452_v52  ;;  %v754_v62 = vadd.f32 %v722_v49, %v654_v48  ;;  %v822_v0 = vmul.f32 %v1383_v63, %v2446_v44 }
  0xd9   : > { %v1152_v53 = vadd.f32 %v1120_v28, %v1052_v40  ;;  %v953_v54 = vadd.f32 %v921_v39, %v853_v47  ;;  %v1421_v4 = vmul.f32 %v2463_v2, %v1385_v45  ;;  %v1121_v50 = vmul.f32 %v1384_v23, %v2454_v55  ;;  %v1188_v40 = vld [vmem:[#allocation2 + $0x98] sm:$0xff] }
  0xda   : > { %v1452_v3 = vadd.f32 %v1420_v36, %v1352_v19  ;;  %v623_v26 = vmul.f32 %v1184_v5, %v2442_v42  ;;  %v854_v10 = vadd.f32 %v822_v0, %v754_v62  ;;  %v922_v34 = vmul.f32 %v1185_v8, %v2450_v51 }
  0xdb   : > { %v1253_v6 = vadd.f32 %v1221_v18, %v1152_v53  ;;  %v1053_v7 = vadd.f32 %v1021_v37, %v953_v54  ;;  %v1222_v11 = vmul.f32 %v2456_v57, %v1186_v58  ;;  %v1322_v14 = vmul.f32 %v2460_v60, %v1286_v61  ;;  %v1288_v18 = vld [vmem:[#allocation2 + $0x99] sm:$0xff] }
  0xdc   : > { %1484 = vst.msk [vmem:[%s2523_s9 + $0x28] sm:$0xff] %vm506_vm1, %v1452_v3  ;;  %v655_v63 = vadd.f32 %v2440_v41, %v623_v26  ;;  %v723_v56 = vmul.f32 %v1284_v13, %v2444_v43  ;;  %v954_v20 = vadd.f32 %v922_v34, %v854_v10  ;;  %v1022_v5 = vmul.f32 %v1285_v22, %v2452_v52  ;;  %v1189_v34 = vld [vmem:[#allocation2 + $0xa8] sm:$0xff] }
  0xdd   : > { %v1353_v12 = vadd.f32 %v1321_v38, %v1253_v6  ;;  %v1153_v15 = vadd.f32 %v1121_v50, %v1053_v7  ;;  %v1422_v46 = vmul.f32 %v2463_v2, %v1386_v9  ;;  %v823_v17 = vmul.f32 %v1384_v23, %v2446_v44 }
  0xde   : > { %v755_v1 = vadd.f32 %v723_v56, %v655_v63  ;;  %v624_v25 = vmul.f32 %v1185_v8, %v2442_v42  ;;  %v1054_v16 = vadd.f32 %v1022_v5, %v954_v20  ;;  %v1122_v13 = vmul.f32 %v1385_v45, %v2454_v55  ;;  %v1389_v5 = vld [vmem:[#allocation2 + $0xaa] sm:$0xff] }
  0xdf   : > { %v1453_v59 = vadd.f32 %v1421_v4, %v1353_v12  ;;  %v1254_v27 = vadd.f32 %v1222_v11, %v1153_v15  ;;  %v923_v31 = vmul.f32 %v1186_v58, %v2450_v51  ;;  %v724_v33 = vmul.f32 %v1285_v22, %v2444_v43  ;;  %v1388_v4 = vld [vmem:[#allocation2 + $0x9a] sm:$0xff]  ;;  %v1289_v11 = vld [vmem:[#allocation2 + $0xa9] sm:$0xff] }
  0xe0   : > { %v855_v30 = vadd.f32 %v823_v17, %v755_v1  ;;  %v656_v32 = vadd.f32 %v2440_v41, %v624_v25  ;;  %v1154_v36 = vadd.f32 %v1122_v13, %v1054_v16  ;;  %v1223_v23 = vmul.f32 %v2456_v57, %v1187_v21 }
  0xe1   : > { %1485 = vst.msk [vmem:[%s2523_s9 + $0x30] sm:$0xff] %vm506_vm1, %v1453_v59  ;;  %v1354_v35 = vadd.f32 %v1322_v14, %v1254_v27  ;;  %v1323_v8 = vmul.f32 %v2460_v60, %v1287_v24  ;;  %v1023_v39 = vmul.f32 %v1286_v61, %v2452_v52  ;;  %v824_v48 = vmul.f32 %v1385_v45, %v2446_v44 }
  0xe2   : > { %v955_v28 = vadd.f32 %v923_v31, %v855_v30  ;;  %v756_v47 = vadd.f32 %v724_v33, %v656_v32  ;;  %v1255_v19 = vadd.f32 %v1223_v23, %v1154_v36  ;;  %v1423_v22 = vmul.f32 %v2463_v2, %v1387_v29  ;;  %v1190_v30 = vld [vmem:[#allocation2 + $0xb0] sm:$0xff] }
  0xe3   : > { %v1454_v49 = vadd.f32 %v1422_v46, %v1354_v35  ;;  %v625_v38 = vmul.f32 %v1186_v58, %v2442_v42  ;;  %v1123_v53 = vmul.f32 %v1386_v9, %v2454_v55  ;;  %v924_v62 = vmul.f32 %v1187_v21, %v2450_v51  ;;  %v1290_v23 = vld [vmem:[#allocation2 + $0xb1] sm:$0xff] }
  0xe4   : > { %v1055_v37 = vadd.f32 %v1023_v39, %v955_v28  ;;  %v856_v54 = vadd.f32 %v824_v48, %v756_v47  ;;  %v1355_v0 = vadd.f32 %v1323_v8, %v1255_v19  ;;  %v1224_v3 = vmul.f32 %v2456_v57, %v1188_v40  ;;  %v1390_v19 = vld [vmem:[#allocation2 + $0xb2] sm:$0xff] }
  0xe5   : > { %1486 = vst.msk [vmem:[%s2523_s9 + $0x38] sm:$0xff] %vm506_vm1, %v1454_v49  ;;  %v657_v45 = vadd.f32 %v2440_v41, %v625_v38  ;;  %v725_v50 = vmul.f32 %v1286_v61, %v2444_v43  ;;  %v1324_v58 = vmul.f32 %v2460_v60, %v1288_v18  ;;  %v1024_v7 = vmul.f32 %v1287_v24, %v2452_v52 }
  0xe6   : > { %v1155_v26 = vadd.f32 %v1123_v53, %v1055_v37  ;;  %v956_v6 = vadd.f32 %v924_v62, %v856_v54  ;;  %v1455_v10 = vadd.f32 %v1423_v22, %v1355_v0  ;;  %v825_v63 = vmul.f32 %v1386_v9, %v2446_v44  ;;  %v1191_v62 = vld [vmem:[#allocation2 + $0xc0] sm:$0xff] }
  0xe7   : > { %v757_v14 = vadd.f32 %v725_v50, %v657_v45  ;;  %v626_v56 = vmul.f32 %v1187_v21, %v2442_v42  ;;  %v1424_v15 = vmul.f32 %v2463_v2, %v1388_v4  ;;  %v1124_v61 = vmul.f32 %v1387_v29, %v2454_v55  ;;  %v1291_v0 = vld [vmem:[#allocation2 + $0xc1] sm:$0xff] }
  0xe8   : > { %v1256_v12 = vadd.f32 %v1224_v3, %v1155_v26  ;;  %v1056_v20 = vadd.f32 %v1024_v7, %v956_v6  ;;  %1487 = vst.msk [vmem:[%s2523_s9 + $0x40] sm:$0xff] %vm506_vm1, %v1455_v10  ;;  %v925_v1 = vmul.f32 %v1188_v40, %v2450_v51  ;;  %v726_v25 = vmul.f32 %v1287_v24, %v2444_v43  ;;  %v1391_v7 = vld [vmem:[#allocation2 + $0xc2] sm:$0xff] }
  0xe9   : > { %v857_v46 = vadd.f32 %v825_v63, %v757_v14  ;;  %v658_v17 = vadd.f32 %v2440_v41, %v626_v56  ;;  %v1225_v21 = vmul.f32 %v2456_v57, %v1189_v34  ;;  %v1325_v27 = vmul.f32 %v2460_v60, %v1289_v11 }
  0xea   : > { %v1356_v59 = vadd.f32 %v1324_v58, %v1256_v12  ;;  %v1156_v9 = vadd.f32 %v1124_v61, %v1056_v20  ;;  %v1025_v13 = vmul.f32 %v1288_v18, %v2452_v52  ;;  %v826_v32 = vmul.f32 %v1387_v29, %v2446_v44 }
  0xeb   : > { %v957_v16 = vadd.f32 %v925_v1, %v857_v46  ;;  %v758_v31 = vadd.f32 %v726_v25, %v658_v17  ;;  %v1425_v36 = vmul.f32 %v2463_v2, %v1389_v5  ;;  %v627_v24 = vmul.f32 %v1188_v40, %v2442_v42  ;;  %v1192_v46 = vld [vmem:[#allocation2 + $0xc8] sm:$0xff] }
  0xec   : > { %v1456_v33 = vadd.f32 %v1424_v15, %v1356_v59  ;;  %v1257_v35 = vadd.f32 %v1225_v21, %v1156_v9  ;;  %v1125_v28 = vmul.f32 %v1388_v4, %v2454_v55  ;;  %v926_v47 = vmul.f32 %v1189_v34, %v2450_v51  ;;  %v1292_v21 = vld [vmem:[#allocation2 + $0xc9] sm:$0xff] }
  0xed   : > { %v1057_v8 = vadd.f32 %v1025_v13, %v957_v16  ;;  %v858_v39 = vadd.f32 %v826_v32, %v758_v31  ;;  %v1226_v49 = vmul.f32 %v2456_v57, %v1190_v30  ;;  %v659_v29 = vadd.f32 %v2440_v41, %v627_v24 }
  0xee   : > { %1488 = vst.msk [vmem:[%s2523_s9 + $0x48] sm:$0xff] %vm506_vm1, %v1456_v33  ;;  %v1357_v48 = vadd.f32 %v1325_v27, %v1257_v35  ;;  %v727_v22 = vmul.f32 %v1288_v18, %v2444_v43  ;;  %v1326_v40 = vmul.f32 %v2460_v60, %v1290_v23  ;;  %v1026_v53 = vmul.f32 %v1289_v11, %v2452_v52  ;;  %v1392_v35 = vld [vmem:[#allocation2 + $0xca] sm:$0xff] }
  0xef   : > { %v1157_v38 = vadd.f32 %v1125_v28, %v1057_v8  ;;  %v958_v37 = vadd.f32 %v926_v47, %v858_v39  ;;  %v827_v45 = vmul.f32 %v1388_v4, %v2446_v44  ;;  %v628_v50 = vmul.f32 %v1189_v34, %v2442_v42  ;;  %v1193_v47 = vld [vmem:[#allocation2 + $0xd8] sm:$0xff] }
  0xf0   : > { %v1457_v54 = vadd.f32 %v1425_v36, %v1357_v48  ;;  %v759_v3 = vadd.f32 %v727_v22, %v659_v29  ;;  %v1426_v58 = vmul.f32 %v2463_v2, %v1390_v19  ;;  %v1126_v18 = vmul.f32 %v1389_v5, %v2454_v55  ;;  %v1293_v48 = vld [vmem:[#allocation2 + $0xd9] sm:$0xff] }
  0xf1   : > { %v1258_v26 = vadd.f32 %v1226_v49, %v1157_v38  ;;  %v1058_v6 = vadd.f32 %v1026_v53, %v958_v37  ;;  %v927_v14 = vmul.f32 %v1190_v30, %v2450_v51  ;;  %v660_v63 = vadd.f32 %v2440_v41, %v628_v50  ;;  %v1393_v53 = vld [vmem:[#allocation2 + $0xda] sm:$0xff] }
  0xf2   : > { %1489 = vst.msk [vmem:[%s2523_s9 + $0x50] sm:$0xff] %vm506_vm1, %v1457_v54  ;;  %v859_v10 = vadd.f32 %v827_v45, %v759_v3  ;;  %v728_v56 = vmul.f32 %v1289_v11, %v2444_v43  ;;  %v1227_v34 = vmul.f32 %v2456_v57, %v1191_v62  ;;  %v1327_v15 = vmul.f32 %v2460_v60, %v1291_v0 }
  0xf3   : > { %v1358_v12 = vadd.f32 %v1326_v40, %v1258_v26  ;;  %v1158_v4 = vadd.f32 %v1126_v18, %v1058_v6  ;;  %v1027_v61 = vmul.f32 %v1290_v23, %v2452_v52  ;;  %v828_v17 = vmul.f32 %v1389_v5, %v2446_v44 }
  0xf4   : > { %v959_v20 = vadd.f32 %v927_v14, %v859_v10  ;;  %v760_v1 = vadd.f32 %v728_v56, %v660_v63  ;;  %v1427_v9 = vmul.f32 %v2463_v2, %v1391_v7  ;;  %v629_v11 = vmul.f32 %v1190_v30, %v2442_v42  ;;  %v1194_v10 = vld [vmem:[#allocation2 + $0xe0] sm:$0xff] }
  0xf5   : > { %v1458_v25 = vadd.f32 %v1426_v58, %v1358_v12  ;;  %v1259_v59 = vadd.f32 %v1227_v34, %v1158_v4  ;;  %v1127_v16 = vmul.f32 %v1390_v19, %v2454_v55  ;;  %v928_v31 = vmul.f32 %v1191_v62, %v2450_v51  ;;  %v1294_v34 = vld [vmem:[#allocation2 + $0xe1] sm:$0xff] }
  0xf6   : > { %v1059_v27 = vadd.f32 %v1027_v61, %v959_v20  ;;  %v860_v13 = vadd.f32 %v828_v17, %v760_v1  ;;  %v1228_v33 = vmul.f32 %v2456_v57, %v1192_v46  ;;  %v661_v5 = vadd.f32 %v2440_v41, %v629_v11 }
  0xf7   : > { %1490 = vst.msk [vmem:[%s2523_s9 + $0x58] sm:$0xff] %vm506_vm1, %v1458_v25  ;;  %v1359_v32 = vadd.f32 %v1327_v15, %v1259_v59  ;;  %v729_v36 = vmul.f32 %v1290_v23, %v2444_v43  ;;  %v1328_v30 = vmul.f32 %v2460_v60, %v1292_v21  ;;  %v1028_v28 = vmul.f32 %v1291_v0, %v2452_v52  ;;  %v1394_v59 = vld [vmem:[#allocation2 + $0xe2] sm:$0xff] }
  0xf8   : > { %v1159_v24 = vadd.f32 %v1127_v16, %v1059_v27  ;;  %v960_v8 = vadd.f32 %v928_v31, %v860_v13  ;;  %v829_v29 = vmul.f32 %v1390_v19, %v2446_v44  ;;  %v630_v22 = vmul.f32 %v1191_v62, %v2442_v42  ;;  %v1195_v31 = vld [vmem:[#allocation2 + $0xf0] sm:$0xff] }
  0xf9   : > { %v1459_v39 = vadd.f32 %v1427_v9, %v1359_v32  ;;  %v761_v49 = vadd.f32 %v729_v36, %v661_v5  ;;  %v1428_v40 = vmul.f32 %v2463_v2, %v1392_v35  ;;  %v1128_v23 = vmul.f32 %v1391_v7, %v2454_v55  ;;  %v1295_v32 = vld [vmem:[#allocation2 + $0xf1] sm:$0xff] }
  0xfa   : > { %v1260_v38 = vadd.f32 %v1228_v33, %v1159_v24  ;;  %v1060_v37 = vadd.f32 %v1028_v28, %v960_v8  ;;  %v929_v3 = vmul.f32 %v1192_v46, %v2450_v51  ;;  %v662_v45 = vadd.f32 %v2440_v41, %v630_v22  ;;  %v1395_v28 = vld [vmem:[#allocation2 + $0xf2] sm:$0xff] }
  0xfb   : > { %1491 = vst.msk [vmem:[%s2523_s9 + $0x60] sm:$0xff] %vm506_vm1, %v1459_v39  ;;  %v861_v54 = vadd.f32 %v829_v29, %v761_v49  ;;  %v730_v50 = vmul.f32 %v1291_v0, %v2444_v43  ;;  %v1229_v62 = vmul.f32 %v2456_v57, %v1193_v47  ;;  %v1329_v58 = vmul.f32 %v2460_v60, %v1293_v48 }
  0xfc   : > { %v1360_v26 = vadd.f32 %v1328_v30, %v1260_v38  ;;  %v1160_v19 = vadd.f32 %v1128_v23, %v1060_v37  ;;  %v1029_v18 = vmul.f32 %v1292_v21, %v2452_v52  ;;  %v830_v63 = vmul.f32 %v1391_v7, %v2446_v44 }
  0xfd   : > { %v961_v6 = vadd.f32 %v929_v3, %v861_v54  ;;  %v762_v14 = vadd.f32 %v730_v50, %v662_v45  ;;  %v1429_v4 = vmul.f32 %v2463_v2, %v1393_v53  ;;  %v631_v0 = vmul.f32 %v1192_v46, %v2442_v42  ;;  %v1196_v54 = vld [vmem:[#allocation2 + $0xf8] sm:$0xff] }
  0xfe   : > { %v1460_v56 = vadd.f32 %v1428_v40, %v1360_v26  ;;  %v1261_v12 = vadd.f32 %v1229_v62, %v1160_v19  ;;  %v1129_v20 = vmul.f32 %v1392_v35, %v2454_v55  ;;  %v930_v1 = vmul.f32 %v1193_v47, %v2450_v51  ;;  %v1296_v62 = vld [vmem:[#allocation2 + $0xf9] sm:$0xff] }
  0xff   : > { %v1061_v15 = vadd.f32 %v1029_v18, %v961_v6  ;;  %v862_v61 = vadd.f32 %v830_v63, %v762_v14  ;;  %v1230_v25 = vmul.f32 %v2456_v57, %v1194_v10  ;;  %v663_v7 = vadd.f32 %v2440_v41, %v631_v0 }
 0x100   : > { %1492 = vst.msk [vmem:[%s2523_s9 + $0x68] sm:$0xff] %vm506_vm1, %v1460_v56  ;;  %v1361_v17 = vadd.f32 %v1329_v58, %v1261_v12  ;;  %v731_v9 = vmul.f32 %v1292_v21, %v2444_v43  ;;  %v1330_v46 = vmul.f32 %v2460_v60, %v1294_v34  ;;  %v1030_v16 = vmul.f32 %v1293_v48, %v2452_v52  ;;  %v1396_v12 = vld [vmem:[#allocation2 + $0xfa] sm:$0xff] }
 0x101   : > { %v1161_v11 = vadd.f32 %v1129_v20, %v1061_v15  ;;  %v962_v27 = vadd.f32 %v930_v1, %v862_v61  ;;  %v831_v5 = vmul.f32 %v1392_v35, %v2446_v44  ;;  %v632_v36 = vmul.f32 %v1193_v47, %v2442_v42  ;;  %v1197_v1 = vld [vmem:[#allocation2 + $0x108] sm:$0xff] }
 0x102   : > { %v1461_v13 = vadd.f32 %v1429_v4, %v1361_v17  ;;  %v763_v33 = vadd.f32 %v731_v9, %v663_v7  ;;  %v1430_v30 = vmul.f32 %v2463_v2, %v1394_v59  ;;  %v1130_v21 = vmul.f32 %v1393_v53, %v2454_v55  ;;  %v1297_v17 = vld [vmem:[#allocation2 + $0x109] sm:$0xff] }
 0x103   : > { %v1262_v24 = vadd.f32 %v1230_v25, %v1161_v11  ;;  %v1062_v8 = vadd.f32 %v1030_v16, %v962_v27  ;;  %v931_v49 = vmul.f32 %v1194_v10, %v2450_v51  ;;  %v664_v29 = vadd.f32 %v2440_v41, %v632_v36  ;;  %v1397_v16 = vld [vmem:[#allocation2 + $0x10a] sm:$0xff] }
 0x104   : > { %1493 = vst.msk [vmem:[%s2523_s9 + $0x70] sm:$0xff] %vm506_vm1, %v1461_v13  ;;  %v863_v39 = vadd.f32 %v831_v5, %v763_v33  ;;  %v732_v22 = vmul.f32 %v1293_v48, %v2444_v43  ;;  %v1231_v47 = vmul.f32 %v2456_v57, %v1195_v31  ;;  %v1331_v40 = vmul.f32 %v2460_v60, %v1295_v32 }
 0x105   : > { %v1362_v38 = vadd.f32 %v1330_v46, %v1262_v24  ;;  %v1162_v35 = vadd.f32 %v1130_v21, %v1062_v8  ;;  %v1031_v23 = vmul.f32 %v1294_v34, %v2452_v52  ;;  %v832_v45 = vmul.f32 %v1393_v53, %v2446_v44 }
 0x106   : > { %v963_v37 = vadd.f32 %v931_v49, %v863_v39  ;;  %v764_v3 = vadd.f32 %v732_v22, %v664_v29  ;;  %v1431_v19 = vmul.f32 %v2463_v2, %v1395_v28  ;;  %v633_v48 = vmul.f32 %v1194_v10, %v2442_v42  ;;  %v1198_v39 = vld [vmem:[#allocation2 + $0x110] sm:$0xff] }
 0x107   : > { %v1462_v50 = vadd.f32 %v1430_v30, %v1362_v38  ;;  %v1263_v26 = vadd.f32 %v1231_v47, %v1162_v35  ;;  %v1131_v6 = vmul.f32 %v1394_v59, %v2454_v55  ;;  %v932_v14 = vmul.f32 %v1195_v31, %v2450_v51  ;;  %v1298_v47 = vld [vmem:[#allocation2 + $0x111] sm:$0xff] }
 0x108   : > { %v1063_v58 = vadd.f32 %v1031_v23, %v963_v37  ;;  %v864_v18 = vadd.f32 %v832_v45, %v764_v3  ;;  %v1232_v56 = vmul.f32 %v2456_v57, %v1196_v54  ;;  %v665_v53 = vadd.f32 %v2440_v41, %v633_v48 }
 0x109   : > { %1494 = vst.msk [vmem:[%s2523_s9 + $0x78] sm:$0xff] %vm506_vm1, %v1462_v50  ;;  %v1363_v63 = vadd.f32 %v1331_v40, %v1263_v26  ;;  %v733_v4 = vmul.f32 %v1294_v34, %v2444_v43  ;;  %v1332_v10 = vmul.f32 %v2460_v60, %v1296_v62  ;;  %v1032_v20 = vmul.f32 %v1295_v32, %v2452_v52  ;;  %v1398_v26 = vld [vmem:[#allocation2 + $0x112] sm:$0xff] }
 0x10a   : > { %v1163_v0 = vadd.f32 %v1131_v6, %v1063_v58  ;;  %v964_v15 = vadd.f32 %v932_v14, %v864_v18  ;;  %v833_v7 = vmul.f32 %v1394_v59, %v2446_v44  ;;  %v634_v9 = vmul.f32 %v1195_v31, %v2442_v42  ;;  %v1199_v14 = vld [vmem:[#allocation2 + $0x120] sm:$0xff] }
 0x10b   : > { %v1463_v61 = vadd.f32 %v1431_v19, %v1363_v63  ;;  %v765_v25 = vadd.f32 %v733_v4, %v665_v53  ;;  %v1432_v46 = vmul.f32 %v2463_v2, %v1396_v12  ;;  %v1132_v34 = vmul.f32 %v1395_v28, %v2454_v55  ;;  %v1299_v63 = vld [vmem:[#allocation2 + $0x121] sm:$0xff] }
 0x10c   : > { %v1264_v11 = vadd.f32 %v1232_v56, %v1163_v0  ;;  %v1064_v27 = vadd.f32 %v1032_v20, %v964_v15  ;;  %v933_v33 = vmul.f32 %v1196_v54, %v2450_v51  ;;  %v666_v5 = vadd.f32 %v2440_v41, %v634_v9  ;;  %v1399_v20 = vld [vmem:[#allocation2 + $0x122] sm:$0xff] }
 0x10d   : > { %1495 = vst.msk [vmem:[%s2523_s9 + $0x80] sm:$0xff] %vm506_vm1, %v1463_v61  ;;  %v865_v13 = vadd.f32 %v833_v7, %v765_v25  ;;  %v734_v36 = vmul.f32 %v1295_v32, %v2444_v43  ;;  %v1233_v31 = vmul.f32 %v2456_v57, %v1197_v1  ;;  %v1333_v30 = vmul.f32 %v2460_v60, %v1297_v17 }
 0x10e   : > { %v1364_v24 = vadd.f32 %v1332_v10, %v1264_v11  ;;  %v1164_v59 = vadd.f32 %v1132_v34, %v1064_v27  ;;  %v1033_v21 = vmul.f32 %v1296_v62, %v2452_v52  ;;  %v834_v29 = vmul.f32 %v1395_v28, %v2446_v44 }
 0x10f   : > { %v965_v8 = vadd.f32 %v933_v33, %v865_v13  ;;  %v766_v49 = vadd.f32 %v734_v36, %v666_v5  ;;  %v1433_v35 = vmul.f32 %v2463_v2, %v1397_v16  ;;  %v635_v32 = vmul.f32 %v1196_v54, %v2442_v42  ;;  %v1200_v13 = vld [vmem:[#allocation2 + $0x128] sm:$0xff] }
 0x110   : > { %v1464_v22 = vadd.f32 %v1432_v46, %v1364_v24  ;;  %v1265_v38 = vadd.f32 %v1233_v31, %v1164_v59  ;;  %v1133_v37 = vmul.f32 %v1396_v12, %v2454_v55  ;;  %v934_v3 = vmul.f32 %v1197_v1, %v2450_v51  ;;  %v1300_v31 = vld [vmem:[#allocation2 + $0x129] sm:$0xff] }
 0x111   : > { %v1065_v40 = vadd.f32 %v1033_v21, %v965_v8  ;;  %v866_v23 = vadd.f32 %v834_v29, %v766_v49  ;;  %v1234_v50 = vmul.f32 %v2456_v57, %v1198_v39  ;;  %v667_v28 = vadd.f32 %v2440_v41, %v635_v32 }
 0x112   : > { %1496 = vst.msk [vmem:[%s2523_s9 + $0x88] sm:$0xff] %vm506_vm1, %v1464_v22  ;;  %v1365_v45 = vadd.f32 %v1333_v30, %v1265_v38  ;;  %v735_v19 = vmul.f32 %v1296_v62, %v2444_v43  ;;  %v1334_v54 = vmul.f32 %v2460_v60, %v1298_v47  ;;  %v1034_v6 = vmul.f32 %v1297_v17, %v2452_v52  ;;  %v1400_v38 = vld [vmem:[#allocation2 + $0x12a] sm:$0xff] }
 0x113   : > { %v1165_v48 = vadd.f32 %v1133_v37, %v1065_v40  ;;  %v966_v58 = vadd.f32 %v934_v3, %v866_v23  ;;  %v835_v53 = vmul.f32 %v1396_v12, %v2446_v44  ;;  %v636_v4 = vmul.f32 %v1197_v1, %v2442_v42  ;;  %v1201_v3 = vld [vmem:[#allocation2 + $0x138] sm:$0xff] }
 0x114   : > { %v1465_v18 = vadd.f32 %v1433_v35, %v1365_v45  ;;  %v767_v56 = vadd.f32 %v735_v19, %v667_v28  ;;  %v1434_v10 = vmul.f32 %v2463_v2, %v1398_v26  ;;  %v1134_v62 = vmul.f32 %v1397_v16, %v2454_v55  ;;  %v1301_v45 = vld [vmem:[#allocation2 + $0x139] sm:$0xff] }
 0x115   : > { %v1266_v0 = vadd.f32 %v1234_v50, %v1165_v48  ;;  %v1066_v15 = vadd.f32 %v1034_v6, %v966_v58  ;;  %v935_v25 = vmul.f32 %v1198_v39, %v2450_v51  ;;  %v668_v7 = vadd.f32 %v2440_v41, %v636_v4  ;;  %v1401_v58 = vld [vmem:[#allocation2 + $0x13a] sm:$0xff] }
 0x116   : > { %1497 = vst.msk [vmem:[%s2523_s9 + $0x90] sm:$0xff] %vm506_vm1, %v1465_v18  ;;  %v867_v61 = vadd.f32 %v835_v53, %v767_v56  ;;  %v736_v9 = vmul.f32 %v1297_v17, %v2444_v43  ;;  %v1235_v1 = vmul.f32 %v2456_v57, %v1199_v14  ;;  %v1335_v46 = vmul.f32 %v2460_v60, %v1299_v63  ;;  %v2767_v56 = vld [vmem:[%s2938_s4] ss:$0 sm:$0xff] }
 0x117   : > { %v1366_v11 = vadd.f32 %v1334_v54, %v1266_v0  ;;  %v1166_v12 = vadd.f32 %v1134_v62, %v1066_v15  ;;  %v1035_v34 = vmul.f32 %v1298_v47, %v2452_v52  ;;  %v836_v5 = vmul.f32 %v1397_v16, %v2446_v44 }
 0x118   : > { %v967_v27 = vadd.f32 %v935_v25, %v867_v61  ;;  %v768_v33 = vadd.f32 %v736_v9, %v668_v7  ;;  %v1435_v59 = vmul.f32 %v2463_v2, %v1399_v20  ;;  %v637_v17 = vmul.f32 %v1198_v39, %v2442_v42  ;;  %v1202_v61 = vld [vmem:[#allocation2 + $0x140] sm:$0xff] }
 0x119   : > { %v1466_v36 = vadd.f32 %v1434_v10, %v1366_v11  ;;  %v1267_v24 = vadd.f32 %v1235_v1, %v1166_v12  ;;  %v1135_v8 = vmul.f32 %v1398_v26, %v2454_v55  ;;  %v936_v49 = vmul.f32 %v1199_v14, %v2450_v51  ;;  %v1302_v1 = vld [vmem:[#allocation2 + $0x141] sm:$0xff] }
 0x11a   : > { %v1067_v30 = vadd.f32 %v1035_v34, %v967_v27  ;;  %v868_v21 = vadd.f32 %v836_v5, %v768_v33  ;;  %v1236_v22 = vmul.f32 %v2456_v57, %v1200_v13  ;;  %v669_v16 = vadd.f32 %v2440_v41, %v637_v17 }
 0x11b   : > { %1498 = vst.msk [vmem:[%s2523_s9 + $0x98] sm:$0xff] %vm506_vm1, %v1466_v36  ;;  %v1367_v29 = vadd.f32 %v1335_v46, %v1267_v24  ;;  %v737_v35 = vmul.f32 %v1298_v47, %v2444_v43  ;;  %v1336_v39 = vmul.f32 %v2460_v60, %v1300_v31  ;;  %v1036_v37 = vmul.f32 %v1299_v63, %v2452_v52  ;;  %v1402_v24 = vld [vmem:[#allocation2 + $0x142] sm:$0xff] }
 0x11c   : > { %v1167_v32 = vadd.f32 %v1135_v8, %v1067_v30  ;;  %v968_v40 = vadd.f32 %v936_v49, %v868_v21  ;;  %v837_v28 = vmul.f32 %v1398_v26, %v2446_v44  ;;  %v638_v19 = vmul.f32 %v1199_v14, %v2442_v42  ;;  %v1203_v49 = vld [vmem:[#allocation2 + $0x150] sm:$0xff] }
 0x11d   : > { %v1467_v23 = vadd.f32 %v1435_v59, %v1367_v29  ;;  %v769_v50 = vadd.f32 %v737_v35, %v669_v16  ;;  %v1436_v41 = vmul.f32 %v2463_v2, %v1400_v38  ;;  %v1136_v47 = vmul.f32 %v1399_v20, %v2454_v55  ;;  %v1303_v29 = vld [vmem:[#allocation2 + $0x151] sm:$0xff] }
 0x11e   : > { %v1268_v48 = vadd.f32 %v1236_v22, %v1167_v32  ;;  %v1068_v54 = vadd.f32 %v1036_v37, %v968_v40  ;;  %v937_v18 = vmul.f32 %v1200_v13, %v2450_v51  ;;  %v670_v26 = vadd.f32 %v2767_v56, %v638_v19  ;;  %v1403_v37 = vld [vmem:[#allocation2 + $0x152] sm:$0xff] }
 0x11f   : > { %1499 = vst.msk [vmem:[%s2523_s9 + $0xa0] sm:$0xff] %vm506_vm1, %v1467_v23  ;;  %v869_v6 = vadd.f32 %v837_v28, %v769_v50  ;;  %v738_v14 = vmul.f32 %v1299_v63, %v2444_v43  ;;  %v1237_v0 = vmul.f32 %v2456_v57, %v1201_v3  ;;  %v1337_v10 = vmul.f32 %v2460_v60, %v1301_v45 }
 0x120   : > { %v1368_v53 = vadd.f32 %v1336_v39, %v1268_v48  ;;  %v1168_v4 = vadd.f32 %v1136_v47, %v1068_v54  ;;  %v1037_v62 = vmul.f32 %v1300_v31, %v2452_v52  ;;  %v838_v7 = vmul.f32 %v1399_v20, %v2446_v44 }
 0x121   : > { %v969_v15 = vadd.f32 %v937_v18, %v869_v6  ;;  %v770_v25 = vadd.f32 %v738_v14, %v670_v26  ;;  %v1437_v12 = vmul.f32 %v2463_v2, %v1401_v58  ;;  %v639_v63 = vmul.f32 %v1200_v13, %v2442_v42  ;;  %v1204_v6 = vld [vmem:[#allocation2 + $0x158] sm:$0xff] }
 0x122   : > { %v1468_v9 = vadd.f32 %v1436_v41, %v1368_v53  ;;  %v1269_v11 = vadd.f32 %v1237_v0, %v1168_v4  ;;  %v1137_v27 = vmul.f32 %v1400_v38, %v2454_v55  ;;  %v938_v33 = vmul.f32 %v1201_v3, %v2450_v51  ;;  %v1304_v0 = vld [vmem:[#allocation2 + $0x159] sm:$0xff] }
 0x123   : > { %v1069_v46 = vadd.f32 %v1037_v62, %v969_v15  ;;  %v870_v34 = vadd.f32 %v838_v7, %v770_v25  ;;  %v1238_v36 = vmul.f32 %v2456_v57, %v1202_v61  ;;  %v671_v20 = vadd.f32 %v2767_v56, %v639_v63 }
 0x124   : > { %1500 = vst.msk [vmem:[%s2523_s9 + $0xa8] sm:$0xff] %vm506_vm1, %v1468_v9  ;;  %v1369_v5 = vadd.f32 %v1337_v10, %v1269_v11  ;;  %v739_v59 = vmul.f32 %v1300_v31, %v2444_v43  ;;  %v1338_v13 = vmul.f32 %v2460_v60, %v1302_v1  ;;  %v1038_v8 = vmul.f32 %v1301_v45, %v2452_v52  ;;  %v1404_v11 = vld [vmem:[#allocation2 + $0x15a] sm:$0xff] }
 0x125   : > { %v1169_v17 = vadd.f32 %v1137_v27, %v1069_v46  ;;  %v970_v30 = vadd.f32 %v938_v33, %v870_v34  ;;  %v839_v16 = vmul.f32 %v1400_v38, %v2446_v44  ;;  %v640_v35 = vmul.f32 %v1201_v3, %v2442_v42  ;;  %v1205_v33 = vld [vmem:[#allocation2 + $0x168] sm:$0xff] }
 0x126   : > { %v1469_v21 = vadd.f32 %v1437_v12, %v1369_v5  ;;  %v771_v22 = vadd.f32 %v739_v59, %v671_v20  ;;  %v1438_v39 = vmul.f32 %v2463_v2, %v1402_v24  ;;  %v1138_v31 = vmul.f32 %v1401_v58, %v2454_v55  ;;  %v1305_v5 = vld [vmem:[#allocation2 + $0x169] sm:$0xff] }
 0x127   : > { %v1270_v32 = vadd.f32 %v1238_v36, %v1169_v17  ;;  %v1070_v40 = vadd.f32 %v1038_v8, %v970_v30  ;;  %v939_v50 = vmul.f32 %v1202_v61, %v2450_v51  ;;  %v672_v28 = vadd.f32 %v2767_v56, %v640_v35  ;;  %v1405_v8 = vld [vmem:[#allocation2 + $0x16a] sm:$0xff] }
 0x128   : > { %1501 = vst.msk [vmem:[%s2523_s9 + $0xb0] sm:$0xff] %vm506_vm1, %v1469_v21  ;;  %v871_v23 = vadd.f32 %v839_v16, %v771_v22  ;;  %v740_v19 = vmul.f32 %v1301_v45, %v2444_v43  ;;  %v1239_v3 = vmul.f32 %v2456_v57, %v1203_v49  ;;  %v1339_v41 = vmul.f32 %v2460_v60, %v1303_v29 }
 0x129   : > { %v1370_v48 = vadd.f32 %v1338_v13, %v1270_v32  ;;  %v1170_v38 = vadd.f32 %v1138_v31, %v1070_v40  ;;  %v1039_v47 = vmul.f32 %v1302_v1, %v2452_v52  ;;  %v840_v26 = vmul.f32 %v1401_v58, %v2446_v44 }
 0x12a   : > { %v971_v54 = vadd.f32 %v939_v50, %v871_v23  ;;  %v772_v18 = vadd.f32 %v740_v19, %v672_v28  ;;  %v1439_v4 = vmul.f32 %v2463_v2, %v1403_v37  ;;  %v641_v45 = vmul.f32 %v1202_v61, %v2442_v42  ;;  %v1206_v23 = vld [vmem:[#allocation2 + $0x170] sm:$0xff] }
 0x12b   : > { %v1470_v14 = vadd.f32 %v1438_v39, %v1370_v48  ;;  %v1271_v53 = vadd.f32 %v1239_v3, %v1170_v38  ;;  %v1139_v15 = vmul.f32 %v1402_v24, %v2454_v55  ;;  %v940_v25 = vmul.f32 %v1203_v49, %v2450_v51  ;;  %v1306_v3 = vld [vmem:[#allocation2 + $0x171] sm:$0xff] }
 0x12c   : > { %v1071_v10 = vadd.f32 %v1039_v47, %v971_v54  ;;  %v872_v62 = vadd.f32 %v840_v26, %v772_v18  ;;  %v1240_v9 = vmul.f32 %v2456_v57, %v1204_v6  ;;  %v673_v58 = vadd.f32 %v2767_v56, %v641_v45 }
 0x12d   : > { %1502 = vst.msk [vmem:[%s2523_s9 + $0xb8] sm:$0xff] %vm506_vm1, %v1470_v14  ;;  %v1371_v7 = vadd.f32 %v1339_v41, %v1271_v53  ;;  %v741_v12 = vmul.f32 %v1302_v1, %v2444_v43  ;;  %v1340_v61 = vmul.f32 %v2460_v60, %v1304_v0  ;;  %v1040_v27 = vmul.f32 %v1303_v29, %v2452_v52  ;;  %v1406_v53 = vld [vmem:[#allocation2 + $0x172] sm:$0xff] }
 0x12e   : > { %v1171_v63 = vadd.f32 %v1139_v15, %v1071_v10  ;;  %v972_v46 = vadd.f32 %v940_v25, %v872_v62  ;;  %v841_v20 = vmul.f32 %v1402_v24, %v2446_v44  ;;  %v642_v59 = vmul.f32 %v1203_v49, %v2442_v42  ;;  %v1207_v25 = vld [vmem:[#allocation2 + $0x180] sm:$0xff] }
 0x12f   : > { %v1471_v34 = vadd.f32 %v1439_v4, %v1371_v7  ;;  %v773_v36 = vadd.f32 %v741_v12, %v673_v58  ;;  %v1440_v13 = vmul.f32 %v2463_v2, %v1404_v11  ;;  %v1140_v1 = vmul.f32 %v1403_v37, %v2454_v55 }
 0x130   : > { %v1272_v17 = vadd.f32 %v1240_v9, %v1171_v63  ;;  %v1072_v30 = vadd.f32 %v1040_v27, %v972_v46  ;;  %v941_v22 = vmul.f32 %v1204_v6, %v2450_v51  ;;  %v674_v16 = vadd.f32 %v2767_v56, %v642_v59 }
 0x131   : > { %1503 = vst.msk [vmem:[%s2523_s9 + $0xc0] sm:$0xff] %vm506_vm1, %v1471_v34  ;;  %v873_v21 = vadd.f32 %v841_v20, %v773_v36  ;;  %v742_v35 = vmul.f32 %v1303_v29, %v2444_v43  ;;  %v1241_v49 = vmul.f32 %v2456_v57, %v1205_v33  ;;  %v1341_v39 = vmul.f32 %v2460_v60, %v1305_v5 }
 0x132   : > { %v1372_v32 = vadd.f32 %v1340_v61, %v1272_v17  ;;  %v1172_v24 = vadd.f32 %v1140_v1, %v1072_v30  ;;  %v1041_v31 = vmul.f32 %v1304_v0, %v2452_v52  ;;  %v842_v28 = vmul.f32 %v1403_v37, %v2446_v44  ;;  %v1407_v17 = vld [vmem:[#allocation2 + $0x182] sm:$0xff] }
 0x133   : > { %v973_v40 = vadd.f32 %v941_v22, %v873_v21  ;;  %v774_v50 = vadd.f32 %v742_v35, %v674_v16  ;;  %v1441_v38 = vmul.f32 %v2463_v2, %v1405_v8  ;;  %v643_v29 = vmul.f32 %v1204_v6, %v2442_v42  ;;  %v1208_v1 = vld [vmem:[#allocation2 + $0x188] sm:$0xff] }
 0x134   : > { %v1472_v19 = vadd.f32 %v1440_v13, %v1372_v32  ;;  %v1273_v48 = vadd.f32 %v1241_v49, %v1172_v24  ;;  %v1141_v54 = vmul.f32 %v1404_v11, %v2454_v55  ;;  %v942_v18 = vmul.f32 %v1205_v33, %v2450_v51 }
 0x135   : > { %v1073_v41 = vadd.f32 %v1041_v31, %v973_v40  ;;  %v874_v47 = vadd.f32 %v842_v28, %v774_v50  ;;  %v1242_v14 = vmul.f32 %v2456_v57, %v1206_v23  ;;  %v675_v37 = vadd.f32 %v2767_v56, %v643_v29 }
 0x136   : > { %1504 = vst.msk [vmem:[%s2523_s9 + $0xc8] sm:$0xff] %vm506_vm1, %v1472_v19  ;;  %v1373_v26 = vadd.f32 %v1341_v39, %v1273_v48  ;;  %v743_v4 = vmul.f32 %v1304_v0, %v2444_v43  ;;  %v1342_v6 = vmul.f32 %v2460_v60, %v1306_v3  ;;  %v1042_v15 = vmul.f32 %v1305_v5, %v2452_v52  ;;  %v1307_v0 = vld [vmem:[#allocation2 + $0x181] sm:$0xff]  ;;  %v1209_v19 = vld [vmem:[#allocation2 + $0x198] sm:$0xff] }
 0x137   : > { %v1173_v45 = vadd.f32 %v1141_v54, %v1073_v41  ;;  %v974_v10 = vadd.f32 %v942_v18, %v874_v47  ;;  %v843_v9 = vmul.f32 %v1404_v11, %v2446_v44  ;;  %v644_v58 = vmul.f32 %v1205_v33, %v2442_v42  ;;  %v1408_v47 = vld [vmem:[#allocation2 + $0x18a] sm:$0xff] }
 0x138   : > { %v1473_v62 = vadd.f32 %v1441_v38, %v1373_v26  ;;  %v775_v7 = vadd.f32 %v743_v4, %v675_v37  ;;  %v1442_v63 = vmul.f32 %v2463_v2, %v1406_v53  ;;  %v1142_v46 = vmul.f32 %v1405_v8, %v2454_v55 }
 0x139   : > { %v1274_v12 = vadd.f32 %v1242_v14, %v1173_v45  ;;  %v1074_v61 = vadd.f32 %v1042_v15, %v974_v10  ;;  %v943_v34 = vmul.f32 %v1206_v23, %v2450_v51  ;;  %v676_v36 = vadd.f32 %v2767_v56, %v644_v58 }
 0x13a   : > { %1505 = vst.msk [vmem:[%s2523_s9 + $0xd0] sm:$0xff] %vm506_vm1, %v1473_v62  ;;  %v875_v27 = vadd.f32 %v843_v9, %v775_v7  ;;  %v744_v20 = vmul.f32 %v1305_v5, %v2444_v43  ;;  %v1243_v33 = vmul.f32 %v2456_v57, %v1207_v25  ;;  %v1043_v13 = vmul.f32 %v1306_v3, %v2452_v52  ;;  %v1308_v5 = vld [vmem:[#allocation2 + $0x189] sm:$0xff]  ;;  %v1210_v62 = vld [vmem:[#allocation2 + $0x1a0] sm:$0xff] }
 0x13b   : > { %v1374_v59 = vadd.f32 %v1342_v6, %v1274_v12  ;;  %v1174_v11 = vadd.f32 %v1142_v46, %v1074_v61  ;;  %v844_v22 = vmul.f32 %v1405_v8, %v2446_v44  ;;  %v944_v16 = vmul.f32 %v1207_v25, %v2450_v51  ;;  %v1409_v25 = vld [vmem:[#allocation2 + $0x19a] sm:$0xff] }
 0x13c   : > { %v975_v30 = vadd.f32 %v943_v34, %v875_v27  ;;  %v776_v21 = vadd.f32 %v744_v20, %v676_v36  ;;  %v1343_v24 = vmul.f32 %v2460_v60, %v1307_v0  ;;  %v645_v49 = vmul.f32 %v1206_v23, %v2442_v42  ;;  %v1410_v34 = vld [vmem:[#allocation2 + $0x1a2] sm:$0xff] }
 0x13d   : > { %v1474_v35 = vadd.f32 %v1442_v63, %v1374_v59  ;;  %v1275_v32 = vadd.f32 %v1243_v33, %v1174_v11  ;;  %v1443_v39 = vmul.f32 %v2463_v2, %v1407_v17  ;;  %v1143_v31 = vmul.f32 %v1406_v53, %v2454_v55 }
 0x13e   : > { %v1075_v40 = vadd.f32 %v1043_v13, %v975_v30  ;;  %v876_v50 = vadd.f32 %v844_v22, %v776_v21  ;;  %v1244_v8 = vmul.f32 %v2456_v57, %v1208_v1  ;;  %v677_v48 = vadd.f32 %v2767_v56, %v645_v49 }
 0x13f   : > { %1506 = vst.msk [vmem:[%s2523_s9 + $0xd8] sm:$0xff] %vm506_vm1, %v1474_v35  ;;  %v1375_v28 = vadd.f32 %v1343_v24, %v1275_v32  ;;  %v745_v38 = vmul.f32 %v1306_v3, %v2444_v43  ;;  %v1344_v42 = vmul.f32 %v2460_v60, %v1308_v5  ;;  %v1044_v41 = vmul.f32 %v1307_v0, %v2452_v52  ;;  %v1309_v43 = vld [vmem:[#allocation2 + $0x199] sm:$0xff] }
 0x140   : > { %v1175_v29 = vadd.f32 %v1143_v31, %v1075_v40  ;;  %v976_v23 = vadd.f32 %v944_v16, %v876_v50  ;;  %v845_v26 = vmul.f32 %v1406_v53, %v2446_v44  ;;  %v945_v14 = vmul.f32 %v1208_v1, %v2450_v51 }
 0x141   : > { %v1475_v54 = vadd.f32 %v1443_v39, %v1375_v28  ;;  %v777_v18 = vadd.f32 %v745_v38, %v677_v48  ;;  %v1144_v45 = vmul.f32 %v1407_v17, %v2454_v55  ;;  %v1245_v56 = vmul.f32 %v2456_v57, %v1209_v19 }
 0x142   : > { %v1276_v37 = vadd.f32 %v1244_v8, %v1175_v29  ;;  %v1076_v4 = vadd.f32 %v1044_v41, %v976_v23  ;;  %v1444_v10 = vmul.f32 %v2463_v2, %v1408_v47  ;;  %v1045_v51 = vmul.f32 %v1308_v5, %v2452_v52  ;;  %v1310_v52 = vld [vmem:[#allocation2 + $0x1a1] sm:$0xff] }
 0x143   : > { %1507 = vst.msk [vmem:[%s2523_s9 + $0xe0] sm:$0xff] %vm506_vm1, %v1475_v54  ;;  %v877_v3 = vadd.f32 %v845_v26, %v777_v18  ;;  %v1345_v9 = vmul.f32 %v2460_v60, %v1309_v43  ;;  %v1145_v12 = vmul.f32 %v1408_v47, %v2454_v55  ;;  %v1246_v63 = vmul.f32 %v2456_v57, %v1210_v62 }
 0x144   : > { %v1376_v6 = vadd.f32 %v1344_v42, %v1276_v37  ;;  %v1176_v15 = vadd.f32 %v1144_v45, %v1076_v4  ;;  %v1445_v46 = vmul.f32 %v2463_v2, %v1409_v25  ;;  %v1346_v20 = vmul.f32 %v2460_v60, %v1310_v52 }
 0x145   : > { %v977_v44 = vadd.f32 %v945_v14, %v877_v3  ;;  %v1446_v57 = vmul.f32 %v2463_v2, %v1410_v34 }
 0x146   : > { %v1476_v53 = vadd.f32 %v1444_v10, %v1376_v6  ;;  %v1277_v7 = vadd.f32 %v1245_v56, %v1176_v15 }
 0x147   : > { %v1077_v58 = vadd.f32 %v1045_v51, %v977_v44 }
 0x148   : > { %1508 = vst.msk [vmem:[%s2523_s9 + $0xe8] sm:$0xff] %vm506_vm1, %v1476_v53  ;;  %v1377_v61 = vadd.f32 %v1345_v9, %v1277_v7 }
 0x149   : > { %v1177_v0 = vadd.f32 %v1145_v12, %v1077_v58 }
 0x14a   : > { %v1477_v27 = vadd.f32 %v1445_v46, %v1377_v61 }
 0x14b   : > { %v1278_v36 = vadd.f32 %v1246_v63, %v1177_v0 }
 0x14c   : > { %1509 = vst.msk [vmem:[%s2523_s9 + $0xf0] sm:$0xff] %vm506_vm1, %v1477_v27 }
 0x14d   : > { %v1378_v55 = vadd.f32 %v1346_v20, %v1278_v36 }
 0x14f   : > { %v1478_v59 = vadd.f32 %v1446_v57, %v1378_v55 }
 0x151   : > { %1510 = vst.msk [vmem:[%s2523_s9 + $0xf8] sm:$0xff] %vm506_vm1, %v1478_v59 }
 0x152   : > { %1951 = shalt.err (!%p1948_p12)
}
 0x153   : > { %s1952_s25 = scalar_lea.hbm %s2881_s24, 4096  ;;  %s1956_s5 = scalar_lea.hbm %s2988_s27, 8192 }
 0x154   : > { %p1953_p0 = scmp.ne.s32.totalorder %s2881_s24, %s1952_s25  ;;  %p1957_p11 = scmp.lt.u32.totalorder %s2881_s24, %s2988_s27 }
 0x155   : > { %p1958_p2 = scmp.lt.u32.totalorder %s1956_s5, %s1952_s25  ;;  %p1960_p5 = scmp.lt.u32.totalorder %s1952_s25, %s2881_s24 }
 0x156   : > { %p1954_p4 = pnand %p1953_p0, %p2989_p10 }
 0x157   : > { %p1959_p1 = por %p1958_p2, %p1957_p11 }
 0x158   : > { %p1955_p7 = pneg %p1954_p4 }
 0x159   : > { %p1961_p13 = por %p1960_p5, %p1959_p1 }
 0x15b   : > { %p1962_p3 = pnand %p1961_p13, %p1955_p7 }
 0x15d   : > { %1965 = shalt.err (!%p1962_p3)
}
 0x15e   : > { %s2040_s13 = smov 128   ;;  %s2041_s26 = smov 8  }
 0x15f   : > { %1739 = dma.vmem_to_hbm [thread:$0]  (%p2989_p10), %s2883_s11, 4096, %s2881_s24, %s1512_s21, %s2040_s13, %s2040_s13, %s2041_s26  }
 0x160 PF: > { %s2990_s8 = sld [smem:[#allocation16_spill]]  ;;  %s2991_s7 = sld [smem:[#allocation22_spill]] }
 0x161   : > { %s2992_s9 = sld [smem:[#allocation19_spill]] }
 0x166   : > { %s1544_s30 = sand.u32 1, %s2990_s8   ;;  %p2993_p9 = scmp.ne.s32.totalorder %s2991_s7, 0 }
 0x167   : > { %p2994_p6 = scmp.ge.s32.totalorder %s2992_s9, 2  ;;  %s1545_s20 = scalar_lea.sflag [#allocation5], %s1544_s30 }
 0x169   : > { %p1756_p8 = pnand %p2994_p6, %p2993_p9 }
 0x16b   : > { %2003 = dma.done.wait (!%p1756_p8), %s1545_s20, 4096  }
 0x16c   : > { %2005 = vsyncadd (!%p1756_p8), %s1545_s20, 4294963200  ;;  %s25_s23 = sadd.s32 1, %s2992_s9   ;;  %s2995_s12 = sld [smem:[#allocation17_spill]] }
 0x16d   : > { %p22_p12 = scmp.ge.s32.totalorder %s25_s23, 4   ;;  %s2996_s20 = sld [smem:[#allocation21_spill]] }
 0x16e   : > { %s2997_s21 = sld [smem:[#allocation18_spill]]  ;;  %s2998_s22 = sld [smem:[#allocation20_spill]] }
 0x16f   : > { %s2999_s18 = smov %s2012_s19  ;;  %24 = sbr.rel (!%p22_p12) target bundleno = 12 (0xc), region = 137 }
 0x172   : > { %s3000_s19 = smov %s2995_s12 }
 0x176   :  { %1550 = vsyncpa [#allocation4], 1 }
 0x177   :  { %1552 = vsyncpa [#allocation4 + $0x1], 1 }
 0x178   :  { %1553 = vsyncpa [#allocation7], 1 }
 0x179   :  { %1555 = vsyncpa [#allocation7 + $0x1], 1 }
 0x17a   :  { %1556 = vsyncpa [#allocation10], 1 }
 0x17b   :  { %1557 = vsyncpa [#allocation5], 1 }
 0x17c   :  { %1559 = vsyncpa [#allocation5 + $0x1], 1 }

</bundles_post_ra>
